<compile_context>
chip_gen: v6e
topology: v6e:2x2x1
jax: 0.10.0
libtpu: 0.0.40
codegen_flags: <defaults>
</compile_context>

<pallas_src>
import functools

import jax
import jax.numpy as jnp
from jax.experimental import pallas as pl
from jax.experimental.pallas import tpu as pltpu

BN_EPS = 1e-5


def _nasnet_cell_kernel(x_ref, w3_ref, w5_ref, w3f_ref, w5f_ref, wpf_ref,
                        b_ref, out_ref, *, H, W, Wp, P_pad, b_blk):
    """One grid step processes b_blk images.

    x_ref:   (C_in, b_blk*P_pad) bf16  zero-padded flat frames (lane-dense)
    w3_ref:  (C_in, 9)  f32            depthwise 3x3 weights, row-major taps
    w5_ref:  (C_in, 25) f32            depthwise 5x5 weights, row-major taps
    w3f_ref: (C_out, C_in) bf16        BN-folded pointwise weights (3x3 branch)
    w5f_ref: (C_out, C_in) bf16        BN-folded pointwise weights (5x5 branch)
    wpf_ref: (C_out, C_in) bf16        BN-folded pool / channel-match weights
    b_ref:   (C_out, 1) f32            fused bias (dw/pw biases + BN folded)
    out_ref: (b_blk, C_out, H*W) f32   lane-dense output block
    """
    xp = x_ref[...].astype(jnp.float32)            # (C_in, b_blk*P_pad)
    L = xp.shape[-1]
    w3 = w3_ref[...]                               # (C_in, 9)
    w5 = w5_ref[...]                               # (C_in, 25)

    d3 = jnp.zeros_like(xp)                        # 3x3 depthwise tap-sum
    d5 = jnp.zeros_like(xp)                        # 5x5 depthwise tap-sum
    ps = jnp.zeros_like(xp)                        # 3x3 avg-pool tap-sum

    # Output position (r, c) of image bb lives at lane j = bb*P_pad + r*Wp + c.
    # Tap (frame offset oh, ow) reads lane j + oh*Wp + ow, which stays inside
    # the same image's padded frame for every valid output, so a circular roll
    # over the whole lane axis never bleeds across images or into the tail.
    # The 3x3 (pad=1) window sits at frame offsets (1..3, 1..3), i.e. it is the
    # centre of the 5x5 (pad=2) window at offsets (0..4, 0..4): 25 rolls total.
    for kh in range(5):
        for kw in range(5):
            off = kh * Wp + kw
            patch = xp if off == 0 else pltpu.roll(xp, shift=L - off, axis=1)
            t5 = kh * 5 + kw
            d5 = d5 + patch * w5[:, t5:t5 + 1]
            if 1 <= kh <= 3 and 1 <= kw <= 3:
                t3 = (kh - 1) * 3 + (kw - 1)
                d3 = d3 + patch * w3[:, t3:t3 + 1]
                ps = ps + patch

    # AvgPool's 1/9 is applied once here (keeps |ps| small before the bf16
    # cast and lets wpf be an exact ones/eye * BN-scale matrix).
    ps = ps * (1.0 / 9.0)

    # Three accumulated single-pass bf16 MXU dots (no concat / RHS reshape);
    # padded columns are carried through the matmul and dropped below.
    acc = jnp.dot(w3f_ref[...], d3.astype(jnp.bfloat16),
                  preferred_element_type=jnp.float32)
    acc = acc + jnp.dot(w5f_ref[...], d5.astype(jnp.bfloat16),
                        preferred_element_type=jnp.float32)
    acc = acc + jnp.dot(wpf_ref[...], ps.astype(jnp.bfloat16),
                        preferred_element_type=jnp.float32)
    y = jnp.maximum(acc + b_ref[...], 0.0)         # (C_out, b_blk*P_pad) f32

    # Epilogue: keep lanes j = bb*P_pad + r*Wp + c (r < H, c < W) and write the
    # lane-dense (C_out, H*W) slab per image.  Static slices only.
    for bb in range(b_blk):
        base = bb * P_pad
        for r in range(H):
            src = base + r * Wp
            out_ref[bb, :, r * W:(r + 1) * W] = y[:, src:src + W]


def _fold_params(params, c_in, c_out):
    """Fold eval-mode BN + all pointwise/depthwise biases into three weight
    slabs and one bias (runs once, tiny, in the wrapper)."""
    scale = params["bn_gamma"] * jax.lax.rsqrt(params["bn_var"] + BN_EPS)  # (C_out,)
    if c_in != c_out:
        # F.conv2d with ones (C_out, C_in, 1, 1) after avg-pool == channel sum.
        w_pool = jnp.ones((c_out, c_in), jnp.float32)
    else:
        w_pool = jnp.eye(c_in, dtype=jnp.float32)
    # Depthwise biases commute with the pointwise conv:  pw(dw(x)+b_dw)+b_pw
    #   = pw(dw(x)) + (pw @ b_dw + b_pw).
    b_comb = (params["pw3_b"] + params["pw5_b"]
              + params["pw3_w"] @ params["dw3_b"]
              + params["pw5_w"] @ params["dw5_b"])                          # (C_out,)
    w3f = (scale[:, None] * params["pw3_w"]).astype(jnp.bfloat16)
    w5f = (scale[:, None] * params["pw5_w"]).astype(jnp.bfloat16)
    wpf = (scale[:, None] * w_pool).astype(jnp.bfloat16)
    b_fold = scale * (b_comb - params["bn_mean"]) + params["bn_beta"]
    return w3f, w5f, wpf, b_fold.reshape(c_out, 1).astype(jnp.float32)


def nasnet_cell_forward(x, params, b_blk=None):
    """x: (N, C_in, H, W) float32. Returns (N, C_out, H, W) float32."""
    N, c_in, H, W = x.shape
    c_out = params["pw3_w"].shape[0]
    Hp, Wp = H + 4, W + 4
    P_pad = ((Hp * Wp + 127) // 128) * 128          # 128-aligned frame stride

    if b_blk is None:
        b_blk = 2 if (N % 2 == 0 and N >= 4) else 1
    assert N % b_blk == 0, (N, b_blk)

    # Zero-padded, flattened, lane-dense bf16 input: one fused XLA op.
    # bytes(padded bf16) <= bytes(unpadded f32), so HBM traffic for x does not
    # grow, and the kernel needs no memset / misaligned interior copy / scratch.
    xb = x.astype(jnp.bfloat16)
    xp = jnp.pad(xb, ((0, 0), (0, 0), (2, 2), (2, 2)))        # (N, C, Hp, Wp)
    xp = xp.reshape(N, c_in, Hp * Wp)
    xp = jnp.pad(xp, ((0, 0), (0, 0), (0, P_pad - Hp * Wp)))  # (N, C, P_pad)
    xp = jnp.transpose(xp, (1, 0, 2)).reshape(c_in, N * P_pad)

    w3f, w5f, wpf, b_fold = _fold_params(params, c_in, c_out)
    dw3 = params["dw3_w"].reshape(c_in, 9).astype(jnp.float32)
    dw5 = params["dw5_w"].reshape(c_in, 25).astype(jnp.float32)

    kernel = functools.partial(_nasnet_cell_kernel, H=H, W=W, Wp=Wp,
                               P_pad=P_pad, b_blk=b_blk)

    in_specs = [
        pl.BlockSpec((c_in, b_blk * P_pad), lambda n: (0, n)),   # x frames
        pl.BlockSpec((c_in, 9), lambda n: (0, 0)),               # dw 3x3
        pl.BlockSpec((c_in, 25), lambda n: (0, 0)),              # dw 5x5
        pl.BlockSpec((c_out, c_in), lambda n: (0, 0)),           # fused pw 3x3
        pl.BlockSpec((c_out, c_in), lambda n: (0, 0)),           # fused pw 5x5
        pl.BlockSpec((c_out, c_in), lambda n: (0, 0)),           # fused pool
        pl.BlockSpec((c_out, 1), lambda n: (0, 0)),              # fused bias
    ]
    out_spec = pl.BlockSpec((b_blk, c_out, H * W), lambda n: (n, 0, 0))

    out_flat = pl.pallas_call(
        kernel,
        out_shape=jax.ShapeDtypeStruct((N, c_out, H * W), jnp.float32),
        grid_spec=pltpu.PrefetchScalarGridSpec(
            num_scalar_prefetch=0,
            grid=(N // b_blk,),
            in_specs=in_specs,
            out_specs=out_spec,
        ),
        compiler_params=pltpu.CompilerParams(
            dimension_semantics=("parallel",)),
    )(xp, dw3, dw5, w3f, w5f, wpf, b_fold)

    return out_flat.reshape(N, c_out, H, W)


# ---------------------------------------------------------------------------
# Pure-JAX reference (mirrors the PyTorch ops) -- verification only.
# ---------------------------------------------------------------------------
def _conv2d_ref(x, w, b=None, stride=1, padding=0, groups=1):
    out = jax.lax.conv_general_dilated(
        x, w, (stride, stride), [(padding, padding)] * 2,
        dimension_numbers=("NCHW", "OIHW", "NCHW"),
        feature_group_count=groups,
        precision=jax.lax.Precision.HIGHEST)
    if b is not None:
        out = out + b[None, :, None, None]
    return out


def nasnet_cell_reference(x, params):
    c_in = x.shape[1]
    c_out = params["pw3_w"].shape[0]
    # SeparableConv 3x3
    d3 = _conv2d_ref(x, params["dw3_w"][:, None], params["dw3_b"], padding=1, groups=c_in)
    b1 = _conv2d_ref(d3, params["pw3_w"][:, :, None, None], params["pw3_b"])
    # SeparableConv 5x5
    d5 = _conv2d_ref(x, params["dw5_w"][:, None], params["dw5_b"], padding=2, groups=c_in)
    b2 = _conv2d_ref(d5, params["pw5_w"][:, :, None, None], params["pw5_b"])
    # AvgPool 3x3 stride 1 pad 1 (count_include_pad=True, PyTorch default)
    ones_k = jnp.full((c_in, 1, 3, 3), 1.0 / 9.0, jnp.float32)
    b3 = _conv2d_ref(x, ones_k, padding=1, groups=c_in)
    if c_in != c_out:
        b3 = _conv2d_ref(b3, jnp.ones((c_out, c_in, 1, 1), jnp.float32))
    out = b1 + b2 + b3
    out = (out - params["bn_mean"][None, :, None, None]) \
        * jax.lax.rsqrt(params["bn_var"][None, :, None, None] + BN_EPS) \
        * params["bn_gamma"][None, :, None, None] + params["bn_beta"][None, :, None, None]
    return jnp.maximum(out, 0.0)


def init_params(key, c_in, c_out):
    ks = jax.random.split(key, 8)
    return {
        "dw3_w": 0.1 * jax.random.normal(ks[0], (c_in, 3, 3), jnp.float32),
        "dw3_b": 0.1 * jax.random.normal(ks[1], (c_in,), jnp.float32),
        "pw3_w": 0.1 * jax.random.normal(ks[2], (c_out, c_in), jnp.float32),
        "pw3_b": 0.1 * jax.random.normal(ks[3], (c_out,), jnp.float32),
        "dw5_w": 0.1 * jax.random.normal(ks[4], (c_in, 5, 5), jnp.float32),
        "dw5_b": 0.1 * jax.random.normal(ks[5], (c_in,), jnp.float32),
        "pw5_w": 0.1 * jax.random.normal(ks[6], (c_out, c_in), jnp.float32),
        "pw5_b": 0.1 * jax.random.normal(ks[7], (c_out,), jnp.float32),
        # PyTorch BatchNorm2d defaults (eval mode): gamma=1, beta=0, mean=0, var=1
        "bn_gamma": jnp.ones((c_out,), jnp.float32),
        "bn_beta": jnp.zeros((c_out,), jnp.float32),
        "bn_mean": jnp.zeros((c_out,), jnp.float32),
        "bn_var": jnp.ones((c_out,), jnp.float32),
    }


if __name__ == "__main__":
    key = jax.random.PRNGKey(0)
    k_x, k_p, k_x2, k_p2 = jax.random.split(key, 4)

    # Main check: C_in != C_out exercises the ones-conv channel-matching path.
    N, C_IN, H, W = 2, 4, 16, 16
    C_OUT = 8
    x = jax.random.normal(k_x, (N, C_IN, H, W), jnp.float32)
    params = init_params(k_p, C_IN, C_OUT)

    out = jax.block_until_ready(nasnet_cell_forward(x, params))
    ref = jax.block_until_ready(nasnet_cell_reference(x, params))
    assert out.shape == (N, C_OUT, H, W), out.shape
    # bf16 input + bf16 MXU operands (per the perf review): typical error is a
    # few e-3 on O(1) outputs; 3e-2 leaves ~2x headroom over the worst case.
    err = float(jnp.max(jnp.abs(out - ref)))
    assert jnp.allclose(out, ref, atol=3e-2, rtol=3e-2), err

    # Secondary check: C_in == C_out (identity pool path) + batch-blocking
    # (b_blk=2 images concatenated along the lane axis per grid step).
    N2, C2 = 4, 8
    x2 = jax.random.normal(k_x2, (N2, C2, H, W), jnp.float32)
    params2 = init_params(k_p2, C2, C2)
    out2 = jax.block_until_ready(nasnet_cell_forward(x2, params2, b_blk=2))
    ref2 = jax.block_until_ready(nasnet_cell_reference(x2, params2))
    assert out2.shape == (N2, C2, H, W), out2.shape
    err2 = float(jnp.max(jnp.abs(out2 - ref2)))
    assert jnp.allclose(out2, ref2, atol=3e-2, rtol=3e-2), err2

    print("KERNEL_OK")
</pallas_src>

<mosaic_0001>
module attributes {stable_mosaic.version = 11 : i64} {
  func.func @_nasnet_cell_kernel(%arg0: i32, %arg1: memref<4x512xbf16, #tpu.memory_space<vmem>>, %arg2: memref<4x9xf32, #tpu.memory_space<vmem>>, %arg3: memref<4x25xf32, #tpu.memory_space<vmem>>, %arg4: memref<8x4xbf16, #tpu.memory_space<vmem>>, %arg5: memref<8x4xbf16, #tpu.memory_space<vmem>>, %arg6: memref<8x4xbf16, #tpu.memory_space<vmem>>, %arg7: memref<8x1xf32, #tpu.memory_space<vmem>>, %arg8: memref<1x8x256xf32, #tpu.memory_space<vmem>>) attributes {dimension_semantics = [#tpu.dimension_semantics<parallel>], iteration_bounds = array<i64: 2>, scalar_prefetch = 0 : i64, scratch_operands = 0 : i64, tpu.core_type = #tpu.core_type<tc>, window_params = [{transform_indices = @transform_0, window_bounds = array<i64: 4, 512>}, {pipeline_mode = #tpu.pipeline_mode<synchronous>, transform_indices = @transform_1, window_bounds = array<i64: 4, 9>}, {pipeline_mode = #tpu.pipeline_mode<synchronous>, transform_indices = @transform_2, window_bounds = array<i64: 4, 25>}, {pipeline_mode = #tpu.pipeline_mode<synchronous>, transform_indices = @transform_3, window_bounds = array<i64: 8, 4>}, {pipeline_mode = #tpu.pipeline_mode<synchronous>, transform_indices = @transform_4, window_bounds = array<i64: 8, 4>}, {pipeline_mode = #tpu.pipeline_mode<synchronous>, transform_indices = @transform_5, window_bounds = array<i64: 8, 4>}, {pipeline_mode = #tpu.pipeline_mode<synchronous>, transform_indices = @transform_6, window_bounds = array<i64: 8, 1>}, {transform_indices = @transform_7, window_bounds = array<i64: 1, 8, 256>}]} {
    %c0 = arith.constant 0 : index
    %c0_0 = arith.constant 0 : index
    %0 = vector.load %arg1[%c0, %c0_0] : memref<4x512xbf16, #tpu.memory_space<vmem>>, vector<4x512xbf16>
    %1 = arith.extf %0 : vector<4x512xbf16> to vector<4x512xf32>
    %c0_1 = arith.constant 0 : index
    %c0_2 = arith.constant 0 : index
    %2 = vector.load %arg2[%c0_1, %c0_2] : memref<4x9xf32, #tpu.memory_space<vmem>>, vector<4x9xf32>
    %c0_3 = arith.constant 0 : index
    %c0_4 = arith.constant 0 : index
    %3 = vector.load %arg3[%c0_3, %c0_4] : memref<4x25xf32, #tpu.memory_space<vmem>>, vector<4x25xf32>
    %cst = arith.constant 0.000000e+00 : f32
    %4 = vector.broadcast %cst : f32 to vector<4x512xf32>
    %cst_5 = arith.constant 0.000000e+00 : f32
    %5 = vector.broadcast %cst_5 : f32 to vector<4x512xf32>
    %cst_6 = arith.constant 0.000000e+00 : f32
    %6 = vector.broadcast %cst_6 : f32 to vector<4x512xf32>
    %7 = vector.extract_strided_slice %3 {offsets = [0, 0], sizes = [4, 1], strides = [1, 1]} : vector<4x25xf32> to vector<4x1xf32>
    %8 = vector.broadcast %7 : vector<4x1xf32> to vector<4x512xf32>
    %9 = arith.mulf %1, %8 : vector<4x512xf32>
    %10 = arith.addf %5, %9 : vector<4x512xf32>
    %c511_i32 = arith.constant 511 : i32
    %11 = tpu.dynamic_rotate %1 by %c511_i32 dim 1 : vector<4x512xf32>, i32 -> vector<4x512xf32>
    %12 = vector.extract_strided_slice %3 {offsets = [0, 1], sizes = [4, 1], strides = [1, 1]} : vector<4x25xf32> to vector<4x1xf32>
    %13 = vector.broadcast %12 : vector<4x1xf32> to vector<4x512xf32>
    %14 = arith.mulf %11, %13 : vector<4x512xf32>
    %15 = arith.addf %10, %14 : vector<4x512xf32>
    %c510_i32 = arith.constant 510 : i32
    %16 = tpu.dynamic_rotate %1 by %c510_i32 dim 1 : vector<4x512xf32>, i32 -> vector<4x512xf32>
    %17 = vector.extract_strided_slice %3 {offsets = [0, 2], sizes = [4, 1], strides = [1, 1]} : vector<4x25xf32> to vector<4x1xf32>
    %18 = vector.broadcast %17 : vector<4x1xf32> to vector<4x512xf32>
    %19 = arith.mulf %16, %18 : vector<4x512xf32>
    %20 = arith.addf %15, %19 : vector<4x512xf32>
    %c509_i32 = arith.constant 509 : i32
    %21 = tpu.dynamic_rotate %1 by %c509_i32 dim 1 : vector<4x512xf32>, i32 -> vector<4x512xf32>
    %22 = vector.extract_strided_slice %3 {offsets = [0, 3], sizes = [4, 1], strides = [1, 1]} : vector<4x25xf32> to vector<4x1xf32>
    %23 = vector.broadcast %22 : vector<4x1xf32> to vector<4x512xf32>
    %24 = arith.mulf %21, %23 : vector<4x512xf32>
    %25 = arith.addf %20, %24 : vector<4x512xf32>
    %c508_i32 = arith.constant 508 : i32
    %26 = tpu.dynamic_rotate %1 by %c508_i32 dim 1 : vector<4x512xf32>, i32 -> vector<4x512xf32>
    %27 = vector.extract_strided_slice %3 {offsets = [0, 4], sizes = [4, 1], strides = [1, 1]} : vector<4x25xf32> to vector<4x1xf32>
    %28 = vector.broadcast %27 : vector<4x1xf32> to vector<4x512xf32>
    %29 = arith.mulf %26, %28 : vector<4x512xf32>
    %30 = arith.addf %25, %29 : vector<4x512xf32>
    %c492_i32 = arith.constant 492 : i32
    %31 = tpu.dynamic_rotate %1 by %c492_i32 dim 1 : vector<4x512xf32>, i32 -> vector<4x512xf32>
    %32 = vector.extract_strided_slice %3 {offsets = [0, 5], sizes = [4, 1], strides = [1, 1]} : vector<4x25xf32> to vector<4x1xf32>
    %33 = vector.broadcast %32 : vector<4x1xf32> to vector<4x512xf32>
    %34 = arith.mulf %31, %33 : vector<4x512xf32>
    %35 = arith.addf %30, %34 : vector<4x512xf32>
    %c491_i32 = arith.constant 491 : i32
    %36 = tpu.dynamic_rotate %1 by %c491_i32 dim 1 : vector<4x512xf32>, i32 -> vector<4x512xf32>
    %37 = vector.extract_strided_slice %3 {offsets = [0, 6], sizes = [4, 1], strides = [1, 1]} : vector<4x25xf32> to vector<4x1xf32>
    %38 = vector.broadcast %37 : vector<4x1xf32> to vector<4x512xf32>
    %39 = arith.mulf %36, %38 : vector<4x512xf32>
    %40 = arith.addf %35, %39 : vector<4x512xf32>
    %41 = vector.extract_strided_slice %2 {offsets = [0, 0], sizes = [4, 1], strides = [1, 1]} : vector<4x9xf32> to vector<4x1xf32>
    %42 = vector.broadcast %41 : vector<4x1xf32> to vector<4x512xf32>
    %43 = arith.mulf %36, %42 : vector<4x512xf32>
    %44 = arith.addf %4, %43 : vector<4x512xf32>
    %45 = arith.addf %6, %36 : vector<4x512xf32>
    %c490_i32 = arith.constant 490 : i32
    %46 = tpu.dynamic_rotate %1 by %c490_i32 dim 1 : vector<4x512xf32>, i32 -> vector<4x512xf32>
    %47 = vector.extract_strided_slice %3 {offsets = [0, 7], sizes = [4, 1], strides = [1, 1]} : vector<4x25xf32> to vector<4x1xf32>
    %48 = vector.broadcast %47 : vector<4x1xf32> to vector<4x512xf32>
    %49 = arith.mulf %46, %48 : vector<4x512xf32>
    %50 = arith.addf %40, %49 : vector<4x512xf32>
    %51 = vector.extract_strided_slice %2 {offsets = [0, 1], sizes = [4, 1], strides = [1, 1]} : vector<4x9xf32> to vector<4x1xf32>
    %52 = vector.broadcast %51 : vector<4x1xf32> to vector<4x512xf32>
    %53 = arith.mulf %46, %52 : vector<4x512xf32>
    %54 = arith.addf %44, %53 : vector<4x512xf32>
    %55 = arith.addf %45, %46 : vector<4x512xf32>
    %c489_i32 = arith.constant 489 : i32
    %56 = tpu.dynamic_rotate %1 by %c489_i32 dim 1 : vector<4x512xf32>, i32 -> vector<4x512xf32>
    %57 = vector.extract_strided_slice %3 {offsets = [0, 8], sizes = [4, 1], strides = [1, 1]} : vector<4x25xf32> to vector<4x1xf32>
    %58 = vector.broadcast %57 : vector<4x1xf32> to vector<4x512xf32>
    %59 = arith.mulf %56, %58 : vector<4x512xf32>
    %60 = arith.addf %50, %59 : vector<4x512xf32>
    %61 = vector.extract_strided_slice %2 {offsets = [0, 2], sizes = [4, 1], strides = [1, 1]} : vector<4x9xf32> to vector<4x1xf32>
    %62 = vector.broadcast %61 : vector<4x1xf32> to vector<4x512xf32>
    %63 = arith.mulf %56, %62 : vector<4x512xf32>
    %64 = arith.addf %54, %63 : vector<4x512xf32>
    %65 = arith.addf %55, %56 : vector<4x512xf32>
    %c488_i32 = arith.constant 488 : i32
    %66 = tpu.dynamic_rotate %1 by %c488_i32 dim 1 : vector<4x512xf32>, i32 -> vector<4x512xf32>
    %67 = vector.extract_strided_slice %3 {offsets = [0, 9], sizes = [4, 1], strides = [1, 1]} : vector<4x25xf32> to vector<4x1xf32>
    %68 = vector.broadcast %67 : vector<4x1xf32> to vector<4x512xf32>
    %69 = arith.mulf %66, %68 : vector<4x512xf32>
    %70 = arith.addf %60, %69 : vector<4x512xf32>
    %c472_i32 = arith.constant 472 : i32
    %71 = tpu.dynamic_rotate %1 by %c472_i32 dim 1 : vector<4x512xf32>, i32 -> vector<4x512xf32>
    %72 = vector.extract_strided_slice %3 {offsets = [0, 10], sizes = [4, 1], strides = [1, 1]} : vector<4x25xf32> to vector<4x1xf32>
    %73 = vector.broadcast %72 : vector<4x1xf32> to vector<4x512xf32>
    %74 = arith.mulf %71, %73 : vector<4x512xf32>
    %75 = arith.addf %70, %74 : vector<4x512xf32>
    %c471_i32 = arith.constant 471 : i32
    %76 = tpu.dynamic_rotate %1 by %c471_i32 dim 1 : vector<4x512xf32>, i32 -> vector<4x512xf32>
    %77 = vector.extract_strided_slice %3 {offsets = [0, 11], sizes = [4, 1], strides = [1, 1]} : vector<4x25xf32> to vector<4x1xf32>
    %78 = vector.broadcast %77 : vector<4x1xf32> to vector<4x512xf32>
    %79 = arith.mulf %76, %78 : vector<4x512xf32>
    %80 = arith.addf %75, %79 : vector<4x512xf32>
    %81 = vector.extract_strided_slice %2 {offsets = [0, 3], sizes = [4, 1], strides = [1, 1]} : vector<4x9xf32> to vector<4x1xf32>
    %82 = vector.broadcast %81 : vector<4x1xf32> to vector<4x512xf32>
    %83 = arith.mulf %76, %82 : vector<4x512xf32>
    %84 = arith.addf %64, %83 : vector<4x512xf32>
    %85 = arith.addf %65, %76 : vector<4x512xf32>
    %c470_i32 = arith.constant 470 : i32
    %86 = tpu.dynamic_rotate %1 by %c470_i32 dim 1 : vector<4x512xf32>, i32 -> vector<4x512xf32>
    %87 = vector.extract_strided_slice %3 {offsets = [0, 12], sizes = [4, 1], strides = [1, 1]} : vector<4x25xf32> to vector<4x1xf32>
    %88 = vector.broadcast %87 : vector<4x1xf32> to vector<4x512xf32>
    %89 = arith.mulf %86, %88 : vector<4x512xf32>
    %90 = arith.addf %80, %89 : vector<4x512xf32>
    %91 = vector.extract_strided_slice %2 {offsets = [0, 4], sizes = [4, 1], strides = [1, 1]} : vector<4x9xf32> to vector<4x1xf32>
    %92 = vector.broadcast %91 : vector<4x1xf32> to vector<4x512xf32>
    %93 = arith.mulf %86, %92 : vector<4x512xf32>
    %94 = arith.addf %84, %93 : vector<4x512xf32>
    %95 = arith.addf %85, %86 : vector<4x512xf32>
    %c469_i32 = arith.constant 469 : i32
    %96 = tpu.dynamic_rotate %1 by %c469_i32 dim 1 : vector<4x512xf32>, i32 -> vector<4x512xf32>
    %97 = vector.extract_strided_slice %3 {offsets = [0, 13], sizes = [4, 1], strides = [1, 1]} : vector<4x25xf32> to vector<4x1xf32>
    %98 = vector.broadcast %97 : vector<4x1xf32> to vector<4x512xf32>
    %99 = arith.mulf %96, %98 : vector<4x512xf32>
    %100 = arith.addf %90, %99 : vector<4x512xf32>
    %101 = vector.extract_strided_slice %2 {offsets = [0, 5], sizes = [4, 1], strides = [1, 1]} : vector<4x9xf32> to vector<4x1xf32>
    %102 = vector.broadcast %101 : vector<4x1xf32> to vector<4x512xf32>
    %103 = arith.mulf %96, %102 : vector<4x512xf32>
    %104 = arith.addf %94, %103 : vector<4x512xf32>
    %105 = arith.addf %95, %96 : vector<4x512xf32>
    %c468_i32 = arith.constant 468 : i32
    %106 = tpu.dynamic_rotate %1 by %c468_i32 dim 1 : vector<4x512xf32>, i32 -> vector<4x512xf32>
    %107 = vector.extract_strided_slice %3 {offsets = [0, 14], sizes = [4, 1], strides = [1, 1]} : vector<4x25xf32> to vector<4x1xf32>
    %108 = vector.broadcast %107 : vector<4x1xf32> to vector<4x512xf32>
    %109 = arith.mulf %106, %108 : vector<4x512xf32>
    %110 = arith.addf %100, %109 : vector<4x512xf32>
    %c452_i32 = arith.constant 452 : i32
    %111 = tpu.dynamic_rotate %1 by %c452_i32 dim 1 : vector<4x512xf32>, i32 -> vector<4x512xf32>
    %112 = vector.extract_strided_slice %3 {offsets = [0, 15], sizes = [4, 1], strides = [1, 1]} : vector<4x25xf32> to vector<4x1xf32>
    %113 = vector.broadcast %112 : vector<4x1xf32> to vector<4x512xf32>
    %114 = arith.mulf %111, %113 : vector<4x512xf32>
    %115 = arith.addf %110, %114 : vector<4x512xf32>
    %c451_i32 = arith.constant 451 : i32
    %116 = tpu.dynamic_rotate %1 by %c451_i32 dim 1 : vector<4x512xf32>, i32 -> vector<4x512xf32>
    %117 = vector.extract_strided_slice %3 {offsets = [0, 16], sizes = [4, 1], strides = [1, 1]} : vector<4x25xf32> to vector<4x1xf32>
    %118 = vector.broadcast %117 : vector<4x1xf32> to vector<4x512xf32>
    %119 = arith.mulf %116, %118 : vector<4x512xf32>
    %120 = arith.addf %115, %119 : vector<4x512xf32>
    %121 = vector.extract_strided_slice %2 {offsets = [0, 6], sizes = [4, 1], strides = [1, 1]} : vector<4x9xf32> to vector<4x1xf32>
    %122 = vector.broadcast %121 : vector<4x1xf32> to vector<4x512xf32>
    %123 = arith.mulf %116, %122 : vector<4x512xf32>
    %124 = arith.addf %104, %123 : vector<4x512xf32>
    %125 = arith.addf %105, %116 : vector<4x512xf32>
    %c450_i32 = arith.constant 450 : i32
    %126 = tpu.dynamic_rotate %1 by %c450_i32 dim 1 : vector<4x512xf32>, i32 -> vector<4x512xf32>
    %127 = vector.extract_strided_slice %3 {offsets = [0, 17], sizes = [4, 1], strides = [1, 1]} : vector<4x25xf32> to vector<4x1xf32>
    %128 = vector.broadcast %127 : vector<4x1xf32> to vector<4x512xf32>
    %129 = arith.mulf %126, %128 : vector<4x512xf32>
    %130 = arith.addf %120, %129 : vector<4x512xf32>
    %131 = vector.extract_strided_slice %2 {offsets = [0, 7], sizes = [4, 1], strides = [1, 1]} : vector<4x9xf32> to vector<4x1xf32>
    %132 = vector.broadcast %131 : vector<4x1xf32> to vector<4x512xf32>
    %133 = arith.mulf %126, %132 : vector<4x512xf32>
    %134 = arith.addf %124, %133 : vector<4x512xf32>
    %135 = arith.addf %125, %126 : vector<4x512xf32>
    %c449_i32 = arith.constant 449 : i32
    %136 = tpu.dynamic_rotate %1 by %c449_i32 dim 1 : vector<4x512xf32>, i32 -> vector<4x512xf32>
    %137 = vector.extract_strided_slice %3 {offsets = [0, 18], sizes = [4, 1], strides = [1, 1]} : vector<4x25xf32> to vector<4x1xf32>
    %138 = vector.broadcast %137 : vector<4x1xf32> to vector<4x512xf32>
    %139 = arith.mulf %136, %138 : vector<4x512xf32>
    %140 = arith.addf %130, %139 : vector<4x512xf32>
    %141 = vector.extract_strided_slice %2 {offsets = [0, 8], sizes = [4, 1], strides = [1, 1]} : vector<4x9xf32> to vector<4x1xf32>
    %142 = vector.broadcast %141 : vector<4x1xf32> to vector<4x512xf32>
    %143 = arith.mulf %136, %142 : vector<4x512xf32>
    %144 = arith.addf %134, %143 : vector<4x512xf32>
    %145 = arith.addf %135, %136 : vector<4x512xf32>
    %c448_i32 = arith.constant 448 : i32
    %146 = tpu.dynamic_rotate %1 by %c448_i32 dim 1 : vector<4x512xf32>, i32 -> vector<4x512xf32>
    %147 = vector.extract_strided_slice %3 {offsets = [0, 19], sizes = [4, 1], strides = [1, 1]} : vector<4x25xf32> to vector<4x1xf32>
    %148 = vector.broadcast %147 : vector<4x1xf32> to vector<4x512xf32>
    %149 = arith.mulf %146, %148 : vector<4x512xf32>
    %150 = arith.addf %140, %149 : vector<4x512xf32>
    %c432_i32 = arith.constant 432 : i32
    %151 = tpu.dynamic_rotate %1 by %c432_i32 dim 1 : vector<4x512xf32>, i32 -> vector<4x512xf32>
    %152 = vector.extract_strided_slice %3 {offsets = [0, 20], sizes = [4, 1], strides = [1, 1]} : vector<4x25xf32> to vector<4x1xf32>
    %153 = vector.broadcast %152 : vector<4x1xf32> to vector<4x512xf32>
    %154 = arith.mulf %151, %153 : vector<4x512xf32>
    %155 = arith.addf %150, %154 : vector<4x512xf32>
    %c431_i32 = arith.constant 431 : i32
    %156 = tpu.dynamic_rotate %1 by %c431_i32 dim 1 : vector<4x512xf32>, i32 -> vector<4x512xf32>
    %157 = vector.extract_strided_slice %3 {offsets = [0, 21], sizes = [4, 1], strides = [1, 1]} : vector<4x25xf32> to vector<4x1xf32>
    %158 = vector.broadcast %157 : vector<4x1xf32> to vector<4x512xf32>
    %159 = arith.mulf %156, %158 : vector<4x512xf32>
    %160 = arith.addf %155, %159 : vector<4x512xf32>
    %c430_i32 = arith.constant 430 : i32
    %161 = tpu.dynamic_rotate %1 by %c430_i32 dim 1 : vector<4x512xf32>, i32 -> vector<4x512xf32>
    %162 = vector.extract_strided_slice %3 {offsets = [0, 22], sizes = [4, 1], strides = [1, 1]} : vector<4x25xf32> to vector<4x1xf32>
    %163 = vector.broadcast %162 : vector<4x1xf32> to vector<4x512xf32>
    %164 = arith.mulf %161, %163 : vector<4x512xf32>
    %165 = arith.addf %160, %164 : vector<4x512xf32>
    %c429_i32 = arith.constant 429 : i32
    %166 = tpu.dynamic_rotate %1 by %c429_i32 dim 1 : vector<4x512xf32>, i32 -> vector<4x512xf32>
    %167 = vector.extract_strided_slice %3 {offsets = [0, 23], sizes = [4, 1], strides = [1, 1]} : vector<4x25xf32> to vector<4x1xf32>
    %168 = vector.broadcast %167 : vector<4x1xf32> to vector<4x512xf32>
    %169 = arith.mulf %166, %168 : vector<4x512xf32>
    %170 = arith.addf %165, %169 : vector<4x512xf32>
    %c428_i32 = arith.constant 428 : i32
    %171 = tpu.dynamic_rotate %1 by %c428_i32 dim 1 : vector<4x512xf32>, i32 -> vector<4x512xf32>
    %172 = vector.extract_strided_slice %3 {offsets = [0, 24], sizes = [4, 1], strides = [1, 1]} : vector<4x25xf32> to vector<4x1xf32>
    %173 = vector.broadcast %172 : vector<4x1xf32> to vector<4x512xf32>
    %174 = arith.mulf %171, %173 : vector<4x512xf32>
    %175 = arith.addf %170, %174 : vector<4x512xf32>
    %cst_7 = arith.constant 0.111111112 : f32
    %176 = vector.broadcast %cst_7 : f32 to vector<4x512xf32>
    %177 = arith.mulf %145, %176 : vector<4x512xf32>
    %c0_8 = arith.constant 0 : index
    %c0_9 = arith.constant 0 : index
    %178 = vector.load %arg4[%c0_8, %c0_9] : memref<8x4xbf16, #tpu.memory_space<vmem>>, vector<8x4xbf16>
    %179 = arith.truncf %144 : vector<4x512xf32> to vector<4x512xbf16>
    %cst_10 = arith.constant dense<0.000000e+00> : vector<8x512xf32>
    %180 = tpu.matmul %178, %179, %cst_10 {dimension_numbers = #tpu.dot_dimension_numbers<[1], [0], [0], [1], [0, 0, 1, 1], [], []>} : vector<8x4xbf16>, vector<4x512xbf16>, vector<8x512xf32> -> vector<8x512xf32>
    %c0_11 = arith.constant 0 : index
    %c0_12 = arith.constant 0 : index
    %181 = vector.load %arg5[%c0_11, %c0_12] : memref<8x4xbf16, #tpu.memory_space<vmem>>, vector<8x4xbf16>
    %182 = arith.truncf %175 : vector<4x512xf32> to vector<4x512xbf16>
    %cst_13 = arith.constant dense<0.000000e+00> : vector<8x512xf32>
    %183 = tpu.matmul %181, %182, %cst_13 {dimension_numbers = #tpu.dot_dimension_numbers<[1], [0], [0], [1], [0, 0, 1, 1], [], []>} : vector<8x4xbf16>, vector<4x512xbf16>, vector<8x512xf32> -> vector<8x512xf32>
    %184 = arith.addf %180, %183 : vector<8x512xf32>
    %c0_14 = arith.constant 0 : index
    %c0_15 = arith.constant 0 : index
    %185 = vector.load %arg6[%c0_14, %c0_15] : memref<8x4xbf16, #tpu.memory_space<vmem>>, vector<8x4xbf16>
    %186 = arith.truncf %177 : vector<4x512xf32> to vector<4x512xbf16>
    %cst_16 = arith.constant dense<0.000000e+00> : vector<8x512xf32>
    %187 = tpu.matmul %185, %186, %cst_16 {dimension_numbers = #tpu.dot_dimension_numbers<[1], [0], [0], [1], [0, 0, 1, 1], [], []>} : vector<8x4xbf16>, vector<4x512xbf16>, vector<8x512xf32> -> vector<8x512xf32>
    %188 = arith.addf %184, %187 : vector<8x512xf32>
    %c0_17 = arith.constant 0 : index
    %c0_18 = arith.constant 0 : index
    %189 = vector.load %arg7[%c0_17, %c0_18] : memref<8x1xf32, #tpu.memory_space<vmem>>, vector<8x1xf32>
    %190 = vector.broadcast %189 : vector<8x1xf32> to vector<8x512xf32>
    %191 = arith.addf %188, %190 : vector<8x512xf32>
    %cst_19 = arith.constant 0.000000e+00 : f32
    %192 = vector.broadcast %cst_19 : f32 to vector<8x512xf32>
    %193 = arith.maximumf %191, %192 : vector<8x512xf32>
    %194 = vector.extract_strided_slice %193 {offsets = [0, 0], sizes = [8, 16], strides = [1, 1]} : vector<8x512xf32> to vector<8x16xf32>
    %c0_20 = arith.constant 0 : index
    %c0_21 = arith.constant 0 : index
    %c0_22 = arith.constant 0 : index
    %195 = vector.load %arg8[%c0_20, %c0_21, %c0_22] : memref<1x8x256xf32, #tpu.memory_space<vmem>>, vector<1x8x16xf32>
    %196 = vector.shape_cast %195 : vector<1x8x16xf32> to vector<8x16xf32>
    %197 = vector.shape_cast %194 : vector<8x16xf32> to vector<1x8x16xf32>
    tpu.vector_store %arg8[%c0_20, %c0_21, %c0_22], %197 {strides = array<i32>} : memref<1x8x256xf32, #tpu.memory_space<vmem>>, vector<1x8x16xf32>,
    %198 = vector.extract_strided_slice %193 {offsets = [0, 20], sizes = [8, 16], strides = [1, 1]} : vector<8x512xf32> to vector<8x16xf32>
    %c0_23 = arith.constant 0 : index
    %c0_24 = arith.constant 0 : index
    %c16 = arith.constant 16 : index
    %199 = vector.load %arg8[%c0_23, %c0_24, %c16] : memref<1x8x256xf32, #tpu.memory_space<vmem>>, vector<1x8x16xf32>
    %200 = vector.shape_cast %199 : vector<1x8x16xf32> to vector<8x16xf32>
    %201 = vector.shape_cast %198 : vector<8x16xf32> to vector<1x8x16xf32>
    tpu.vector_store %arg8[%c0_23, %c0_24, %c16], %201 {strides = array<i32>} : memref<1x8x256xf32, #tpu.memory_space<vmem>>, vector<1x8x16xf32>,
    %202 = vector.extract_strided_slice %193 {offsets = [0, 40], sizes = [8, 16], strides = [1, 1]} : vector<8x512xf32> to vector<8x16xf32>
    %c0_25 = arith.constant 0 : index
    %c0_26 = arith.constant 0 : index
    %c32 = arith.constant 32 : index
    %203 = vector.load %arg8[%c0_25, %c0_26, %c32] : memref<1x8x256xf32, #tpu.memory_space<vmem>>, vector<1x8x16xf32>
    %204 = vector.shape_cast %203 : vector<1x8x16xf32> to vector<8x16xf32>
    %205 = vector.shape_cast %202 : vector<8x16xf32> to vector<1x8x16xf32>
    tpu.vector_store %arg8[%c0_25, %c0_26, %c32], %205 {strides = array<i32>} : memref<1x8x256xf32, #tpu.memory_space<vmem>>, vector<1x8x16xf32>,
    %206 = vector.extract_strided_slice %193 {offsets = [0, 60], sizes = [8, 16], strides = [1, 1]} : vector<8x512xf32> to vector<8x16xf32>
    %c0_27 = arith.constant 0 : index
    %c0_28 = arith.constant 0 : index
    %c48 = arith.constant 48 : index
    %207 = vector.load %arg8[%c0_27, %c0_28, %c48] : memref<1x8x256xf32, #tpu.memory_space<vmem>>, vector<1x8x16xf32>
    %208 = vector.shape_cast %207 : vector<1x8x16xf32> to vector<8x16xf32>
    %209 = vector.shape_cast %206 : vector<8x16xf32> to vector<1x8x16xf32>
    tpu.vector_store %arg8[%c0_27, %c0_28, %c48], %209 {strides = array<i32>} : memref<1x8x256xf32, #tpu.memory_space<vmem>>, vector<1x8x16xf32>,
    %210 = vector.extract_strided_slice %193 {offsets = [0, 80], sizes = [8, 16], strides = [1, 1]} : vector<8x512xf32> to vector<8x16xf32>
    %c0_29 = arith.constant 0 : index
    %c0_30 = arith.constant 0 : index
    %c64 = arith.constant 64 : index
    %211 = vector.load %arg8[%c0_29, %c0_30, %c64] : memref<1x8x256xf32, #tpu.memory_space<vmem>>, vector<1x8x16xf32>
    %212 = vector.shape_cast %211 : vector<1x8x16xf32> to vector<8x16xf32>
    %213 = vector.shape_cast %210 : vector<8x16xf32> to vector<1x8x16xf32>
    tpu.vector_store %arg8[%c0_29, %c0_30, %c64], %213 {strides = array<i32>} : memref<1x8x256xf32, #tpu.memory_space<vmem>>, vector<1x8x16xf32>,
    %214 = vector.extract_strided_slice %193 {offsets = [0, 100], sizes = [8, 16], strides = [1, 1]} : vector<8x512xf32> to vector<8x16xf32>
    %c0_31 = arith.constant 0 : index
    %c0_32 = arith.constant 0 : index
    %c80 = arith.constant 80 : index
    %215 = vector.load %arg8[%c0_31, %c0_32, %c80] : memref<1x8x256xf32, #tpu.memory_space<vmem>>, vector<1x8x16xf32>
    %216 = vector.shape_cast %215 : vector<1x8x16xf32> to vector<8x16xf32>
    %217 = vector.shape_cast %214 : vector<8x16xf32> to vector<1x8x16xf32>
    tpu.vector_store %arg8[%c0_31, %c0_32, %c80], %217 {strides = array<i32>} : memref<1x8x256xf32, #tpu.memory_space<vmem>>, vector<1x8x16xf32>,
    %218 = vector.extract_strided_slice %193 {offsets = [0, 120], sizes = [8, 16], strides = [1, 1]} : vector<8x512xf32> to vector<8x16xf32>
    %c0_33 = arith.constant 0 : index
    %c0_34 = arith.constant 0 : index
    %c96 = arith.constant 96 : index
    %219 = vector.load %arg8[%c0_33, %c0_34, %c96] : memref<1x8x256xf32, #tpu.memory_space<vmem>>, vector<1x8x16xf32>
    %220 = vector.shape_cast %219 : vector<1x8x16xf32> to vector<8x16xf32>
    %221 = vector.shape_cast %218 : vector<8x16xf32> to vector<1x8x16xf32>
    tpu.vector_store %arg8[%c0_33, %c0_34, %c96], %221 {strides = array<i32>} : memref<1x8x256xf32, #tpu.memory_space<vmem>>, vector<1x8x16xf32>,
    %222 = vector.extract_strided_slice %193 {offsets = [0, 140], sizes = [8, 16], strides = [1, 1]} : vector<8x512xf32> to vector<8x16xf32>
    %c0_35 = arith.constant 0 : index
    %c0_36 = arith.constant 0 : index
    %c112 = arith.constant 112 : index
    %223 = vector.load %arg8[%c0_35, %c0_36, %c112] : memref<1x8x256xf32, #tpu.memory_space<vmem>>, vector<1x8x16xf32>
    %224 = vector.shape_cast %223 : vector<1x8x16xf32> to vector<8x16xf32>
    %225 = vector.shape_cast %222 : vector<8x16xf32> to vector<1x8x16xf32>
    tpu.vector_store %arg8[%c0_35, %c0_36, %c112], %225 {strides = array<i32>} : memref<1x8x256xf32, #tpu.memory_space<vmem>>, vector<1x8x16xf32>,
    %226 = vector.extract_strided_slice %193 {offsets = [0, 160], sizes = [8, 16], strides = [1, 1]} : vector<8x512xf32> to vector<8x16xf32>
    %c0_37 = arith.constant 0 : index
    %c0_38 = arith.constant 0 : index
    %c128 = arith.constant 128 : index
    %227 = vector.load %arg8[%c0_37, %c0_38, %c128] : memref<1x8x256xf32, #tpu.memory_space<vmem>>, vector<1x8x16xf32>
    %228 = vector.shape_cast %227 : vector<1x8x16xf32> to vector<8x16xf32>
    %229 = vector.shape_cast %226 : vector<8x16xf32> to vector<1x8x16xf32>
    tpu.vector_store %arg8[%c0_37, %c0_38, %c128], %229 {strides = array<i32>} : memref<1x8x256xf32, #tpu.memory_space<vmem>>, vector<1x8x16xf32>,
    %230 = vector.extract_strided_slice %193 {offsets = [0, 180], sizes = [8, 16], strides = [1, 1]} : vector<8x512xf32> to vector<8x16xf32>
    %c0_39 = arith.constant 0 : index
    %c0_40 = arith.constant 0 : index
    %c144 = arith.constant 144 : index
    %231 = vector.load %arg8[%c0_39, %c0_40, %c144] : memref<1x8x256xf32, #tpu.memory_space<vmem>>, vector<1x8x16xf32>
    %232 = vector.shape_cast %231 : vector<1x8x16xf32> to vector<8x16xf32>
    %233 = vector.shape_cast %230 : vector<8x16xf32> to vector<1x8x16xf32>
    tpu.vector_store %arg8[%c0_39, %c0_40, %c144], %233 {strides = array<i32>} : memref<1x8x256xf32, #tpu.memory_space<vmem>>, vector<1x8x16xf32>,
    %234 = vector.extract_strided_slice %193 {offsets = [0, 200], sizes = [8, 16], strides = [1, 1]} : vector<8x512xf32> to vector<8x16xf32>
    %c0_41 = arith.constant 0 : index
    %c0_42 = arith.constant 0 : index
    %c160 = arith.constant 160 : index
    %235 = vector.load %arg8[%c0_41, %c0_42, %c160] : memref<1x8x256xf32, #tpu.memory_space<vmem>>, vector<1x8x16xf32>
    %236 = vector.shape_cast %235 : vector<1x8x16xf32> to vector<8x16xf32>
    %237 = vector.shape_cast %234 : vector<8x16xf32> to vector<1x8x16xf32>
    tpu.vector_store %arg8[%c0_41, %c0_42, %c160], %237 {strides = array<i32>} : memref<1x8x256xf32, #tpu.memory_space<vmem>>, vector<1x8x16xf32>,
    %238 = vector.extract_strided_slice %193 {offsets = [0, 220], sizes = [8, 16], strides = [1, 1]} : vector<8x512xf32> to vector<8x16xf32>
    %c0_43 = arith.constant 0 : index
    %c0_44 = arith.constant 0 : index
    %c176 = arith.constant 176 : index
    %239 = vector.load %arg8[%c0_43, %c0_44, %c176] : memref<1x8x256xf32, #tpu.memory_space<vmem>>, vector<1x8x16xf32>
    %240 = vector.shape_cast %239 : vector<1x8x16xf32> to vector<8x16xf32>
    %241 = vector.shape_cast %238 : vector<8x16xf32> to vector<1x8x16xf32>
    tpu.vector_store %arg8[%c0_43, %c0_44, %c176], %241 {strides = array<i32>} : memref<1x8x256xf32, #tpu.memory_space<vmem>>, vector<1x8x16xf32>,
    %242 = vector.extract_strided_slice %193 {offsets = [0, 240], sizes = [8, 16], strides = [1, 1]} : vector<8x512xf32> to vector<8x16xf32>
    %c0_45 = arith.constant 0 : index
    %c0_46 = arith.constant 0 : index
    %c192 = arith.constant 192 : index
    %243 = vector.load %arg8[%c0_45, %c0_46, %c192] : memref<1x8x256xf32, #tpu.memory_space<vmem>>, vector<1x8x16xf32>
    %244 = vector.shape_cast %243 : vector<1x8x16xf32> to vector<8x16xf32>
    %245 = vector.shape_cast %242 : vector<8x16xf32> to vector<1x8x16xf32>
    tpu.vector_store %arg8[%c0_45, %c0_46, %c192], %245 {strides = array<i32>} : memref<1x8x256xf32, #tpu.memory_space<vmem>>, vector<1x8x16xf32>,
    %246 = vector.extract_strided_slice %193 {offsets = [0, 260], sizes = [8, 16], strides = [1, 1]} : vector<8x512xf32> to vector<8x16xf32>
    %c0_47 = arith.constant 0 : index
    %c0_48 = arith.constant 0 : index
    %c208 = arith.constant 208 : index
    %247 = vector.load %arg8[%c0_47, %c0_48, %c208] : memref<1x8x256xf32, #tpu.memory_space<vmem>>, vector<1x8x16xf32>
    %248 = vector.shape_cast %247 : vector<1x8x16xf32> to vector<8x16xf32>
    %249 = vector.shape_cast %246 : vector<8x16xf32> to vector<1x8x16xf32>
    tpu.vector_store %arg8[%c0_47, %c0_48, %c208], %249 {strides = array<i32>} : memref<1x8x256xf32, #tpu.memory_space<vmem>>, vector<1x8x16xf32>,
    %250 = vector.extract_strided_slice %193 {offsets = [0, 280], sizes = [8, 16], strides = [1, 1]} : vector<8x512xf32> to vector<8x16xf32>
    %c0_49 = arith.constant 0 : index
    %c0_50 = arith.constant 0 : index
    %c224 = arith.constant 224 : index
    %251 = vector.load %arg8[%c0_49, %c0_50, %c224] : memref<1x8x256xf32, #tpu.memory_space<vmem>>, vector<1x8x16xf32>
    %252 = vector.shape_cast %251 : vector<1x8x16xf32> to vector<8x16xf32>
    %253 = vector.shape_cast %250 : vector<8x16xf32> to vector<1x8x16xf32>
    tpu.vector_store %arg8[%c0_49, %c0_50, %c224], %253 {strides = array<i32>} : memref<1x8x256xf32, #tpu.memory_space<vmem>>, vector<1x8x16xf32>,
    %254 = vector.extract_strided_slice %193 {offsets = [0, 300], sizes = [8, 16], strides = [1, 1]} : vector<8x512xf32> to vector<8x16xf32>
    %c0_51 = arith.constant 0 : index
    %c0_52 = arith.constant 0 : index
    %c240 = arith.constant 240 : index
    %255 = vector.load %arg8[%c0_51, %c0_52, %c240] : memref<1x8x256xf32, #tpu.memory_space<vmem>>, vector<1x8x16xf32>
    %256 = vector.shape_cast %255 : vector<1x8x16xf32> to vector<8x16xf32>
    %257 = vector.shape_cast %254 : vector<8x16xf32> to vector<1x8x16xf32>
    tpu.vector_store %arg8[%c0_51, %c0_52, %c240], %257 {strides = array<i32>} : memref<1x8x256xf32, #tpu.memory_space<vmem>>, vector<1x8x16xf32>,
    return
  }
  func.func @transform_0(%arg0: i32) -> (i32, i32) {
    %c0_i32 = arith.constant 0 : i32
    %c0_i32_0 = arith.constant 0 : i32
    return %c0_i32, %arg0 : i32, i32
  }
  func.func @transform_1(%arg0: i32) -> (i32, i32) {
    %c0_i32 = arith.constant 0 : i32
    %c0_i32_0 = arith.constant 0 : i32
    %c0_i32_1 = arith.constant 0 : i32
    return %c0_i32, %c0_i32_0 : i32, i32
  }
  func.func @transform_2(%arg0: i32) -> (i32, i32) {
    %c0_i32 = arith.constant 0 : i32
    %c0_i32_0 = arith.constant 0 : i32
    %c0_i32_1 = arith.constant 0 : i32
    return %c0_i32, %c0_i32_0 : i32, i32
  }
  func.func @transform_3(%arg0: i32) -> (i32, i32) {
    %c0_i32 = arith.constant 0 : i32
    %c0_i32_0 = arith.constant 0 : i32
    %c0_i32_1 = arith.constant 0 : i32
    return %c0_i32, %c0_i32_0 : i32, i32
  }
  func.func @transform_4(%arg0: i32) -> (i32, i32) {
    %c0_i32 = arith.constant 0 : i32
    %c0_i32_0 = arith.constant 0 : i32
    %c0_i32_1 = arith.constant 0 : i32
    return %c0_i32, %c0_i32_0 : i32, i32
  }
  func.func @transform_5(%arg0: i32) -> (i32, i32) {
    %c0_i32 = arith.constant 0 : i32
    %c0_i32_0 = arith.constant 0 : i32
    %c0_i32_1 = arith.constant 0 : i32
    return %c0_i32, %c0_i32_0 : i32, i32
  }
  func.func @transform_6(%arg0: i32) -> (i32, i32) {
    %c0_i32 = arith.constant 0 : i32
    %c0_i32_0 = arith.constant 0 : i32
    %c0_i32_1 = arith.constant 0 : i32
    return %c0_i32, %c0_i32_0 : i32, i32
  }
  func.func @transform_7(%arg0: i32) -> (i32, i32, i32) {
    %c0_i32 = arith.constant 0 : i32
    %c0_i32_0 = arith.constant 0 : i32
    %c0_i32_1 = arith.constant 0 : i32
    return %arg0, %c0_i32, %c0_i32_0 : i32, i32, i32
  }
}

</mosaic_0001>

<bundles_post_ra>
// kernel: tpu_custom_call.1
= control target key start
LH: loop header
LB: loop body
LE: loop exit
PB: predicated region body
PF: predicated region fallthrough
CT: control target
= control target key end

     0   :  { %12 = vsyncpa [#allocation3], 0  ;;  %s3183_s0 = inlined_call_operand.vmem [shape: bf16[4,1024], index: 0, kind: input, shape index: {}]   ;;  %s3184_s1 = inlined_call_operand.vmem [shape: f32[4,9], index: 1, kind: input, shape index: {}]   ;;  %s3185_s2 = inlined_call_operand.vmem [shape: f32[4,25], index: 2, kind: input, shape index: {}]   ;;  %s3186_s3 = inlined_call_operand.vmem [shape: bf16[8,4], index: 3, kind: input, shape index: {}]   ;;  %s3187_s4 = inlined_call_operand.vmem [shape: bf16[8,4], index: 4, kind: input, shape index: {}]   ;;  %s3188_s5 = inlined_call_operand.vmem [shape: bf16[8,4], index: 5, kind: input, shape index: {}]   ;;  %s3189_s6 = inlined_call_operand.vmem [shape: f32[8,1], index: 6, kind: input, shape index: {}]   ;;  %s3190_s7 = inlined_call_operand.hbm [shape: f32[2,8,256], index: 7, kind: output, shape index: {}]  }
   0x1   :  { %14 = vsyncpa [#allocation3 + $0x1], 0  ;;  %s2233_s24 = smov 0   ;;  %s2235_s25 = smov 0  }
   0x2   :  { %s2237_s26 = smov 0   ;;  %s2239_s27 = smov 0  }
   0x3 LB: > { %s2254_s28 = sadd.s32 4294967295, %s2131_s27   ;;  %s1678_s29 = sadd.s32 4294967294, %s2131_s27   ;;  %s2131_s27 = sphi %s2239_s27, %s3248_s27   ;;  %s2127_s26 = sphi %s2237_s26, %s3247_s26   ;;  %s2123_s25 = sphi %s2235_s25, %s3246_s25   ;;  %s2119_s24 = sphi %s2233_s24, %s3245_s24  }
   0x4   : > { %s2258_s30 = sadd.s32 1, %s2131_s27   ;;  %s179_s8 = sadd.s32 1, %s2127_s26 }
   0x5   : > { %s176_s9 = ssub.s32 %s2131_s27, %s2258_s30  ;;  %p189_p0 = scmp.ne.s32.totalorder %s2127_s26, %s2123_s25 }
   0x6   : > { %p177_p1 = scmp.eq.s32.totalorder %s176_s9, 0  ;;  %p190_p2 = scmp.eq.s32.totalorder %s2254_s28, 1 }
   0x7   : > { %p195_p3 = scmp.ne.s32.totalorder %s2123_s25, %s2119_s24  ;;  %p196_p4 = scmp.eq.s32.totalorder %s1678_s29, 1 }
   0x8   : > { %s2269_s10 = scalar_select %p177_p1, %s2127_s26, %s179_s8  }
   0x9   : > { %p2271_p5 = por %p190_p2, %p189_p0  ;;  %p2275_p6 = por %p196_p4, %p195_p3 }
   0xa   : > { %p1681_p7 = scmp.ge.s32.totalorder %s2131_s27, 1  ;;  %p241_p8 = scmp.lt.s32.totalorder %s2131_s27, 3 }
   0xc   : > { %p242_p9 = pnand %p1681_p7, %p241_p8 }
   0xe   : > { %245 = sbr.rel (%p242_p9) target bundleno = 744 (0x2e8), region = 48 }
  0x13   : > { %v2284_v0 = vld [vmem:[%s3185_s2] sm:$0xf]  ;;  %v2133_v1 = vmov 2   ;;  %v3191_v2 = vmov 0   ;;  %s1683_s15 = sshll.u32 %s2254_s28, 2  ;;  %v2135_v3 = vmov 1   ;;  %v292_v41 = vlaneseq }
  0x14   : > { %1803 = vset.pattern.permute.xlu1 %v2133_v1  ;;  %1801 = vset.pattern.permute.xlu0 %v3191_v2  ;;  %p274_p10 = scmp.lt.s32.totalorder %s1683_s15, 7  ;;  %v2136_v7 = vmov 3   ;;  %s2137_s20 = smov 127   ;;  %v2138_v12 = vmov 4   ;;  %v2139_v13 = vmov 5   ;;  %v2141_v14 = vmov 6  }
  0x15   : > { %354 = vperm.xlu1 %1803, %v2284_v0   ;;  %287 = vperm.xlu0 %1801, %v2284_v0   ;;  %s2140_s21 = smov 126   ;;  %s2142_s22 = smov 125   ;;  %v2143_v15 = vmov 7   ;;  %v2144_v16 = vmov 8   ;;  %v2146_v17 = vmov 9   ;;  %v2147_v18 = vmov 10  }
  0x16   : > { %1267 = vmatprep.mubr.bf16.mxu0 %v3191_v2  ;;  %1308 = vmatprep.mubr.bf16.mxu1 %v3191_v2  ;;  %s3250_s15 = smov (!%p274_p10, %s1683_s15), 7  ;;  %s2145_s23 = smov 124   ;;  %v2149_v19 = vmov 11   ;;  %v2151_v20 = vmov 12   ;;  %v2152_v21 = vmov 13   ;;  %v2154_v22 = vmov 14  }
  0x17   : > { %s1684_s16 = sshll.u32 %s3250_s15, 1  ;;  %s2148_s29 = smov 108   ;;  %v2156_v23 = vmov 15   ;;  %v2157_v24 = vmov 16   ;;  %v2159_v25 = vmov 17   ;;  %v2160_v26 = vmov 18  }
  0x18   : > { %s277_s19 = scalar_lea.vmem %s3183_s0, %s1684_s16  ;;  %s2150_s8 = smov 107   ;;  %v2162_v27 = vmov 19   ;;  %v2164_v28 = vmov 20   ;;  %v2165_v29 = vmov 21   ;;  %v2167_v30 = vmov 22  }
  0x19   : > { %1802 = vset.pattern.permute.xlu0 %v2135_v3  ;;  %2024 = vset.pattern.permute.xlu1 %v3191_v2  ;;  %v280_v4 = vld [vmem:[%s277_s19] sm:$0xff]  ;;  %s2153_s9 = smov 106   ;;  %s2155_s13 = smov 105   ;;  %v2170_v31 = vmov 23   ;;  %v2177_v39 = vmov 839922192  }
  0x1a   : > { %323 = vperm.xlu0 %1802, %v2284_v0   ;;  %v2299_v5 = vunpack.c.l.bf16 %v280_v4  ;;  %v2301_v6 = vunpack.c.h.bf16 %v280_v4  ;;  %s2158_s14 = smov 104   ;;  %s2161_s15 = smov 88   ;;  %v2387_v32 = vld [vmem:[%s3184_s1] sm:$0xf]  ;;  %v290_v40 = vunpack.c.l.s4 %v2177_v39  ;;  %v293_v44 = vshrl.u32 %v292_v41, 7 }
  0x1b   : > { %s2163_s16 = smov 87   ;;  %s2166_s17 = smov 86   ;;  %v2411_v45 = vand.u32 127, %v292_v41 }
  0x1c   : > { %v303_v8 = vcombine.high %v2299_v5, %v2299_v5  ;;  %v2308_v9 = vcombine.high %v2301_v6, %v2301_v6  ;;  %s2168_s18 = smov 85   ;;  %s2169_s19 = smov 47   ;;  %v291_v43 = vunpack.c.0.s8 %v290_v40 }
  0x1d   : > { %vm317_vm0 = vcmp.lt.s32.totalorder %v2411_v45, 127  ;;  %vm348_vm1 = vcmp.lt.s32.totalorder %v2411_v45, 126  ;;  %vm379_vm2 = vcmp.lt.s32.totalorder %v2411_v45, 125  ;;  %vm410_vm3 = vcmp.lt.s32.totalorder %v2411_v45, 124 }
  0x1e   : > { %1804 = vset.pattern.permute.xlu0 %v2136_v7  ;;  %v2312_v10 = vpack.i.bf16 %v303_v8, %v2299_v5  ;;  %v2317_v11 = vpack.i.bf16 %v2308_v9, %v2301_v6  ;;  %v294_v51 = vsub.s32 %v291_v43, %v293_v44  ;;  %vm441_vm4 = vcmp.lt.s32.totalorder %v2411_v45, 108 }
  0x1f   : > { %385 = vperm.xlu0 %1804, %v2284_v0   ;;  %vm472_vm5 = vcmp.lt.s32.totalorder %v2411_v45, 107  ;;  %vm520_vm6 = vcmp.lt.s32.totalorder %v2411_v45, 106  ;;  %vm567_vm7 = vcmp.lt.s32.totalorder %v2411_v45, 105  ;;  %vm614_vm8 = vcmp.lt.s32.totalorder %v2411_v45, 104 }
  0x20   : > { %1806 = vrot.lane.b32.xlu1 %v2312_v10, %s2137_s20  ;;  %vm645_vm9 = vcmp.lt.s32.totalorder %v2411_v45, 88  ;;  %vm676_vm10 = vcmp.lt.s32.totalorder %v2411_v45, 87  ;;  %vm723_vm11 = vcmp.lt.s32.totalorder %v2411_v45, 86  ;;  %vm770_vm12 = vcmp.lt.s32.totalorder %v2411_v45, 85 }
  0x21   : > { %vm817_vm13 = vcmp.lt.s32.totalorder %v2411_v45, 84  ;;  %vm848_vm14 = vcmp.lt.s32.totalorder %v2411_v45, 68  ;;  %vm1082_vm15 = vcmp.lt.s32.totalorder %v2411_v45, 47 }
  0x23   : > { %1825 = vset.pattern.permute.xlu0 %v2138_v12 }
  0x24   : > { %416 = vperm.xlu0 %1825, %v2284_v0   ;;  %1811 = vrot.lane.b32.xlu1 %v2317_v11, %s2137_s20  ;;  %s2171_s20 = smov 84  }
  0x28   : > { %1836 = vset.pattern.permute.xlu0 %v2139_v13  ;;  %1816 = vrot.lane.b32.xlu1 %v2312_v10, %s2140_s21 }
  0x29   : > { %447 = vperm.xlu0 %1836, %v2284_v0  }
  0x2c   : > { %1821 = vrot.lane.b32.xlu1 %v2317_v11, %s2140_s21  ;;  %s2172_s21 = smov 46  }
  0x2d   : > { %1847 = vset.pattern.permute.xlu0 %v2141_v14 }
  0x2e   : > { %478 = vperm.xlu0 %1847, %v2284_v0  }
  0x30   : > { %1827 = vrot.lane.b32.xlu1 %v2312_v10, %s2142_s22 }
  0x32   : > { %1858 = vset.pattern.permute.xlu0 %v2143_v15 }
  0x33   : > { %526 = vperm.xlu0 %1858, %v2284_v0  }
  0x34   : > { %1832 = vrot.lane.b32.xlu1 %v2317_v11, %s2142_s22  ;;  %s2179_s22 = smov 64  }
  0x37   : > { %1869 = vset.pattern.permute.xlu0 %v2144_v16 }
  0x38   : > { %573 = vperm.xlu0 %1869, %v2284_v0   ;;  %1838 = vrot.lane.b32.xlu1 %v2312_v10, %s2145_s23 }
  0x3c   : > { %1880 = vset.pattern.permute.xlu0 %v2146_v17  ;;  %1843 = vrot.lane.b32.xlu1 %v2317_v11, %s2145_s23 }
  0x3d   : > { %620 = vperm.xlu0 %1880, %v2284_v0  }
  0x40   : > { %1849 = vrot.lane.b32.xlu1 %v2312_v10, %s2148_s29 }
  0x41   : > { %1891 = vset.pattern.permute.xlu0 %v2147_v18 }
  0x42   : > { %651 = vperm.xlu0 %1891, %v2284_v0  }
  0x44   : > { %1854 = vrot.lane.b32.xlu1 %v2317_v11, %s2148_s29 }
  0x46   : > { %1902 = vset.pattern.permute.xlu0 %v2149_v19 }
  0x47   : > { %682 = vperm.xlu0 %1902, %v2284_v0  }
  0x48   : > { %1860 = vrot.lane.b32.xlu1 %v2312_v10, %s2150_s8 }
  0x4b   : > { %1913 = vset.pattern.permute.xlu0 %v2151_v20 }
  0x4c   : > { %729 = vperm.xlu0 %1913, %v2284_v0   ;;  %1865 = vrot.lane.b32.xlu1 %v2317_v11, %s2150_s8  ;;  %s2180_s8 = smov 48  }
  0x50   : > { %1924 = vset.pattern.permute.xlu0 %v2152_v21  ;;  %1871 = vrot.lane.b32.xlu1 %v2312_v10, %s2153_s9 }
  0x51   : > { %776 = vperm.xlu0 %1924, %v2284_v0  }
  0x54   : > { %1876 = vrot.lane.b32.xlu1 %v2317_v11, %s2153_s9  ;;  %s2173_s9 = smov 68  }
  0x55   : > { %1935 = vset.pattern.permute.xlu0 %v2154_v22 }
  0x56   : > { %823 = vperm.xlu0 %1935, %v2284_v0  }
  0x58   : > { %1882 = vrot.lane.b32.xlu1 %v2312_v10, %s2155_s13 }
  0x5a   : > { %1946 = vset.pattern.permute.xlu0 %v2156_v23 }
  0x5b   : > { %854 = vperm.xlu0 %1946, %v2284_v0  }
  0x5c   : > { %1887 = vrot.lane.b32.xlu1 %v2317_v11, %s2155_s13  ;;  %s2174_s13 = smov 67  }
  0x5f   : > { %1957 = vset.pattern.permute.xlu0 %v2157_v24 }
  0x60   : > { %885 = vperm.xlu0 %1957, %v2284_v0   ;;  %1893 = vrot.lane.b32.xlu1 %v2312_v10, %s2158_s14 }
  0x64   : > { %1968 = vset.pattern.permute.xlu0 %v2159_v25  ;;  %1898 = vrot.lane.b32.xlu1 %v2317_v11, %s2158_s14 }
  0x65   : > { %932 = vperm.xlu0 %1968, %v2284_v0  }
  0x68   : > { %1904 = vrot.lane.b32.xlu1 %v2312_v10, %s2161_s15 }
  0x69   : > { %1979 = vset.pattern.permute.xlu0 %v2160_v26 }
  0x6a   : > { %979 = vperm.xlu0 %1979, %v2284_v0  }
  0x6c   : > { %1909 = vrot.lane.b32.xlu1 %v2317_v11, %s2161_s15 }
  0x6e   : > { %1990 = vset.pattern.permute.xlu0 %v2162_v27 }
  0x6f   : > { %1026 = vperm.xlu0 %1990, %v2284_v0  }
  0x70   : > { %1915 = vrot.lane.b32.xlu1 %v2312_v10, %s2163_s16 }
  0x73   : > { %2001 = vset.pattern.permute.xlu0 %v2164_v28 }
  0x74   : > { %1057 = vperm.xlu0 %2001, %v2284_v0   ;;  %1920 = vrot.lane.b32.xlu1 %v2317_v11, %s2163_s16  ;;  %s2175_s16 = smov 44  }
  0x78   : > { %2012 = vset.pattern.permute.xlu0 %v2165_v29  ;;  %1926 = vrot.lane.b32.xlu1 %v2312_v10, %s2166_s17 }
  0x79   : > { %1088 = vperm.xlu0 %2012, %v2284_v0  }
  0x7c   : > { %1931 = vrot.lane.b32.xlu1 %v2317_v11, %s2166_s17  ;;  %s2176_s17 = smov 66  }
  0x7d   : > { %2023 = vset.pattern.permute.xlu0 %v2167_v30 }
  0x7e   : > { %1119 = vperm.xlu0 %2023, %v2284_v0  }
  0x80   : > { %1937 = vrot.lane.b32.xlu1 %v2312_v10, %s2168_s18 }
  0x82   : > { %2027 = vrot.lane.b32.xlu0 %v2312_v10, %s2169_s19 }
  0x83   : > { %2036 = vset.pattern.permute.xlu0 %v2170_v31 }
  0x84   : > { %1942 = vrot.lane.b32.xlu1 %v2317_v11, %s2168_s18  ;;  %s2178_s18 = smov 65  }
  0x86   : > { %1150 = vperm.xlu0 %2036, %v2284_v0  }
  0x88   : > { %1948 = vrot.lane.b32.xlu1 %v2312_v10, %s2171_s20 }
  0x8a   : > { %2044 = vrot.lane.b32.xlu0 %v2317_v11, %s2172_s21 }
  0x8b   : > { %2049 = vset.pattern.permute.xlu0 %v2136_v7 }
  0x8c   : > { %1953 = vrot.lane.b32.xlu1 %v2317_v11, %s2171_s20 }
  0x8e   : > { %700 = vperm.xlu0 %2049, %v2387_v32  }
  0x90   : > { %v2392_v33 = vpop.permute.xlu1 %354  ;;  %1959 = vrot.lane.b32.xlu1 %v2312_v10, %s2173_s9  ;;  %v288_v38 = vpop.permute.xlu0 %287 }
  0x91   : > { %v295_v58 = vrot.slane %v288_v38, %v294_v51 }
  0x92   : > { %2060 = vset.pattern.permute.xlu0 %v2138_v12 }
  0x93   : > { %747 = vperm.xlu0 %2060, %v2387_v32   ;;  %v297_v17 = vmul.f32 %v295_v58, %v2299_v5  ;;  %v298_v29 = vmul.f32 %v295_v58, %v2301_v6 }
  0x94   : > { %v1807_v34 = vpop.permute.xlu1 %1806  ;;  %1964 = vrot.lane.b32.xlu1 %v2317_v11, %s2173_s9 }
  0x95   : > { %v324_v47 = vpop.permute.xlu0 %323  ;;  %v1809_v49 = vunpack.i.h.bf16 %v1807_v34  ;;  %v1808_v50 = vunpack.i.l.bf16 %v1807_v34 }
  0x97   : > { %2066 = vset.pattern.permute.xlu0 %v2139_v13  ;;  %v320_v56 = vsel %vm317_vm0, %v1808_v50, %v1809_v49 }
  0x98   : > { %794 = vperm.xlu0 %2066, %v2387_v32   ;;  %v1812_v35 = vpop.permute.xlu1 %1811  ;;  %1970 = vrot.lane.b32.xlu1 %v2312_v10, %s2174_s13  ;;  %v326_v8 = vmul.f32 %v324_v47, %v320_v56 }
  0x99   : > { %v1813_v48 = vunpack.i.l.bf16 %v1812_v35  ;;  %v1814_v53 = vunpack.i.h.bf16 %v1812_v35 }
  0x9a   : > { %v2419_v55 = vpop.permute.xlu0 %385 }
  0x9b   : > { %v319_v54 = vsel %vm317_vm0, %v1809_v49, %v1813_v48  ;;  %v318_v61 = vsel %vm317_vm0, %v1813_v48, %v1814_v53  ;;  %v321_v62 = vsel %vm317_vm0, %v1814_v53, %v1808_v50  ;;  %vm1113_vm0 = vcmp.lt.s32.totalorder %v2411_v45, 46 }
  0x9c   : > { %v1817_v36 = vpop.permute.xlu1 %1816  ;;  %1173 = vrot.lane.b32.xlu0 %v2308_v9, %s2175_s16  ;;  %1975 = vrot.lane.b32.xlu1 %v2317_v11, %s2174_s13  ;;  %v327_v59 = vmul.f32 %v324_v47, %v319_v54  ;;  %v328_v18 = vmul.f32 %v324_v47, %v318_v61  ;;  %v329_v19 = vmul.f32 %v324_v47, %v321_v62 }
  0x9d   : > { %2070 = vset.pattern.permute.xlu0 %v3191_v2  ;;  %v1819_v63 = vunpack.i.h.bf16 %v1817_v36  ;;  %v1818_v4 = vunpack.i.l.bf16 %v1817_v36 }
  0x9e   : > { %v334_v20 = vcombine.low %v326_v8, %v327_v59  ;;  %v335_v31 = vcombine.low %v328_v18, %v329_v19 }
  0x9f   : > { %v2424_v7 = vpop.permute.xlu0 %416  ;;  %v351_v22 = vsel %vm348_vm1, %v1818_v4, %v1819_v63 }
  0xa0   : > { %v1822_v37 = vpop.permute.xlu1 %1821  ;;  %1981 = vrot.lane.b32.xlu1 %v2312_v10, %s2176_s17  ;;  %v338_v34 = vadd.f32 %v334_v20, %v297_v17  ;;  %v357_v35 = vmul.f32 %v2392_v33, %v351_v22  ;;  %v339_v58 = vadd.f32 %v335_v31, %v298_v29 }
  0xa1   : > { %v1823_v57 = vunpack.i.l.bf16 %v1822_v37  ;;  %v1824_v9 = vunpack.i.h.bf16 %v1822_v37 }
  0xa3   : > { %v350_v12 = vsel %vm348_vm1, %v1819_v63, %v1823_v57  ;;  %v349_v26 = vsel %vm348_vm1, %v1823_v57, %v1824_v9  ;;  %v352_v27 = vsel %vm348_vm1, %v1824_v9, %v1818_v4  ;;  %vm879_vm1 = vcmp.lt.s32.totalorder %v2411_v45, 67 }
  0xa4   : > { %v2408_v42 = vpop.permute.xlu1 %1827  ;;  %1986 = vrot.lane.b32.xlu1 %v2317_v11, %s2176_s17  ;;  %v2438_v25 = vpop.permute.xlu0 %447  ;;  %v358_v5 = vmul.f32 %v2392_v33, %v350_v12  ;;  %v359_v38 = vmul.f32 %v2392_v33, %v349_v26  ;;  %v360_v39 = vmul.f32 %v2392_v33, %v352_v27  ;;  %s2183_s17 = smov 76  }
  0xa5   : > { %v1830_v23 = vunpack.i.h.bf16 %v2408_v42  ;;  %v1829_v24 = vunpack.i.l.bf16 %v2408_v42 }
  0xa6   : > { %v365_v42 = vcombine.low %v357_v35, %v358_v5  ;;  %v366_v59 = vcombine.low %v359_v38, %v360_v39 }
  0xa7   : > { %v382_v40 = vsel %vm379_vm2, %v1829_v24, %v1830_v23 }
  0xa8   : > { %v2413_v46 = vpop.permute.xlu1 %1832  ;;  %1992 = vrot.lane.b32.xlu1 %v2312_v10, %s2178_s18  ;;  %v388_v51 = vmul.f32 %v2419_v55, %v382_v40 }
  0xa9   : > { %v1834_v13 = vunpack.i.l.bf16 %v2413_v46  ;;  %v1835_v28 = vunpack.i.h.bf16 %v2413_v46  ;;  %v479_v50 = vpop.permute.xlu0 %478 }
  0xab   : > { %v381_v30 = vsel %vm379_vm2, %v1830_v23, %v1834_v13  ;;  %v380_v43 = vsel %vm379_vm2, %v1834_v13, %v1835_v28  ;;  %v383_v33 = vsel %vm379_vm2, %v1835_v28, %v1829_v24  ;;  %vm926_vm2 = vcmp.lt.s32.totalorder %v2411_v45, 66 }
  0xac   : > { %v2417_v52 = vpop.permute.xlu1 %1838  ;;  %1997 = vrot.lane.b32.xlu1 %v2317_v11, %s2178_s18  ;;  %v389_v44 = vmul.f32 %v2419_v55, %v381_v30  ;;  %v390_v62 = vmul.f32 %v2419_v55, %v380_v43  ;;  %v391_v63 = vmul.f32 %v2419_v55, %v383_v33  ;;  %s2184_s18 = smov 120  }
  0xad   : > { %v1841_v46 = vunpack.i.h.bf16 %v2417_v52  ;;  %v1840_v47 = vunpack.i.l.bf16 %v2417_v52  ;;  %v369_v52 = vadd.f32 %v365_v42, %v338_v34 }
  0xae   : > { %v396_v4 = vcombine.low %v388_v51, %v389_v44  ;;  %v527_v23 = vpop.permute.xlu0 %526  ;;  %v397_v27 = vcombine.low %v390_v62, %v391_v63 }
  0xaf   : > { %v413_v8 = vsel %vm410_vm3, %v1840_v47, %v1841_v46 }
  0xb0   : > { %v2422_v60 = vpop.permute.xlu1 %1843  ;;  %2003 = vrot.lane.b32.xlu1 %v2312_v10, %s2179_s22  ;;  %v419_v5 = vmul.f32 %v2424_v7, %v413_v8 }
  0xb1   : > { %v1845_v36 = vunpack.i.l.bf16 %v2422_v60  ;;  %v1846_v41 = vunpack.i.h.bf16 %v2422_v60 }
  0xb3   : > { %v412_v53 = vsel %vm410_vm3, %v1841_v46, %v1845_v36  ;;  %v411_v60 = vsel %vm410_vm3, %v1845_v36, %v1846_v41  ;;  %v414_v61 = vsel %vm410_vm3, %v1846_v41, %v1840_v47  ;;  %v400_v36 = vadd.f32 %v396_v4, %v369_v52 }
  0xb4   : > { %v1850_v21 = vpop.permute.xlu1 %1849  ;;  %2008 = vrot.lane.b32.xlu1 %v2317_v11, %s2179_s22  ;;  %v420_v9 = vmul.f32 %v2424_v7, %v412_v53  ;;  %v421_v17 = vmul.f32 %v2424_v7, %v411_v60  ;;  %v422_v55 = vmul.f32 %v2424_v7, %v414_v61  ;;  %v370_v7 = vadd.f32 %v366_v59, %v339_v58  ;;  %s2185_s22 = smov 92  }
  0xb5   : > { %v1852_v54 = vunpack.i.h.bf16 %v1850_v21  ;;  %v1851_v56 = vunpack.i.l.bf16 %v1850_v21  ;;  %vm973_vm3 = vcmp.lt.s32.totalorder %v2411_v45, 65 }
  0xb6   : > { %v428_v40 = vcombine.low %v421_v17, %v422_v55 }
  0xb7   : > { %v444_v18 = vsel %vm441_vm4, %v1851_v56, %v1852_v54 }
  0xb8   : > { %v1855_v37 = vpop.permute.xlu1 %1854  ;;  %2014 = vrot.lane.b32.xlu1 %v2312_v10, %s2180_s8  ;;  %v450_v38 = vmul.f32 %v2438_v25, %v444_v18 }
  0xb9   : > { %v1857_v48 = vunpack.i.h.bf16 %v1855_v37  ;;  %v1856_v49 = vunpack.i.l.bf16 %v1855_v37  ;;  %v427_v37 = vcombine.low %v419_v5, %v420_v9 }
  0xbb   : > { %v442_v12 = vsel %vm441_vm4, %v1856_v49, %v1857_v48  ;;  %v443_v13 = vsel %vm441_vm4, %v1852_v54, %v1856_v49  ;;  %v445_v19 = vsel %vm441_vm4, %v1857_v48, %v1851_v56  ;;  %v401_v48 = vadd.f32 %v397_v27, %v370_v7 }
  0xbc   : > { %v1861_v57 = vpop.permute.xlu1 %1860  ;;  %2019 = vrot.lane.b32.xlu1 %v2317_v11, %s2180_s8  ;;  %v451_v28 = vmul.f32 %v2438_v25, %v443_v13  ;;  %v452_v29 = vmul.f32 %v2438_v25, %v442_v12  ;;  %v453_v30 = vmul.f32 %v2438_v25, %v445_v19  ;;  %v574_v25 = vpop.permute.xlu0 %573  ;;  %v431_v51 = vadd.f32 %v427_v37, %v400_v36  ;;  %s2186_s8 = smov 116  }
  0xbd   : > { %v1863_v21 = vunpack.i.h.bf16 %v1861_v57  ;;  %v1862_v22 = vunpack.i.l.bf16 %v1861_v57  ;;  %v432_v56 = vadd.f32 %v428_v40, %v401_v48  ;;  %vm1020_vm4 = vcmp.lt.s32.totalorder %v2411_v45, 64 }
  0xbe   : > { %v458_v44 = vcombine.low %v450_v38, %v451_v28  ;;  %v459_v49 = vcombine.low %v452_v29, %v453_v30 }
  0xbf   : > { %v2511_v43 = vsel %vm472_vm5, %v1862_v22, %v1863_v21 }
  0xc0   : > { %v1866_v20 = vpop.permute.xlu1 %1865  ;;  %497 = vperm.xlu1 %2024, %v2387_v32   ;;  %v481_v54 = vmul.f32 %v479_v50, %v2511_v43  ;;  %v462_v59 = vadd.f32 %v458_v44, %v431_v51  ;;  %v463_v52 = vadd.f32 %v459_v49, %v432_v56  ;;  %v621_v17 = vpop.permute.xlu0 %620 }
  0xc1   : > { %v1868_v24 = vunpack.i.h.bf16 %v1866_v20  ;;  %v1867_v26 = vunpack.i.l.bf16 %v1866_v20 }
  0xc3   : > { %v2498_v31 = vsel %vm472_vm5, %v1867_v26, %v1868_v24  ;;  %v2502_v34 = vsel %vm472_vm5, %v1863_v21, %v1867_v26  ;;  %v2506_v35 = vsel %vm472_vm5, %v1868_v24, %v1862_v22  ;;  %vm1051_vm5 = vcmp.lt.s32.totalorder %v2411_v45, 48 }
  0xc4   : > { %v1872_v39 = vpop.permute.xlu1 %1871  ;;  %2025 = vset.pattern.permute.xlu1 %v2135_v3  ;;  %v482_v46 = vmul.f32 %v479_v50, %v2502_v34  ;;  %v483_v33 = vmul.f32 %v479_v50, %v2498_v31  ;;  %v484_v47 = vmul.f32 %v479_v50, %v2506_v35  ;;  %v652_v7 = vpop.permute.xlu0 %651 }
  0xc5   : > { %v1874_v41 = vunpack.i.h.bf16 %v1872_v39  ;;  %v1873_v42 = vunpack.i.l.bf16 %v1872_v39  ;;  %544 = vperm.xlu1 %2025, %v2387_v32  }
  0xc6   : > { %v489_v60 = vcombine.low %v481_v54, %v482_v46  ;;  %v490_v61 = vcombine.low %v483_v33, %v484_v47  ;;  %v2181_v46 = vmov 24  }
  0xc7   : > { %v2521_v3 = vsel %vm520_vm6, %v1873_v42, %v1874_v41 }
  0xc8   : > { %v1877_v53 = vpop.permute.xlu1 %1876  ;;  %v529_v13 = vmul.f32 %v527_v23, %v2521_v3  ;;  %v493_v20 = vadd.f32 %v489_v60, %v462_v59  ;;  %v494_v21 = vadd.f32 %v490_v61, %v463_v52 }
  0xc9   : > { %v1879_v57 = vunpack.i.h.bf16 %v1877_v53  ;;  %v1878_v58 = vunpack.i.l.bf16 %v1877_v53  ;;  %2032 = vrot.lane.b32.xlu1 %v2317_v11, %s2169_s19  ;;  %s2182_s19 = smov 45  }
  0xca   : > { %2037 = vset.pattern.permute.xlu1 %v2133_v1 }
  0xcb   : > { %v2525_v62 = vsel %vm520_vm6, %v1878_v58, %v1879_v57  ;;  %v2529_v63 = vsel %vm520_vm6, %v1874_v41, %v1878_v58  ;;  %v2533_v50 = vsel %vm520_vm6, %v1879_v57, %v1873_v42  ;;  %v683_v58 = vpop.permute.xlu0 %682  ;;  %vm1144_vm6 = vcmp.lt.s32.totalorder %v2411_v45, 45 }
  0xcc   : > { %v530_v4 = vmul.f32 %v527_v23, %v2529_v63  ;;  %v531_v8 = vmul.f32 %v527_v23, %v2525_v62  ;;  %v532_v9 = vmul.f32 %v527_v23, %v2533_v50  ;;  %v1883_v12 = vpop.permute.xlu1 %1882  ;;  %v556_v28 = vadd.f32 %v2529_v63, %v2502_v34 }
  0xcd   : > { %v1885_v55 = vunpack.i.h.bf16 %v1883_v12  ;;  %v1884_v18 = vunpack.i.l.bf16 %v1883_v12  ;;  %591 = vperm.xlu1 %2037, %v2387_v32   ;;  %v557_v29 = vadd.f32 %v2525_v62, %v2498_v31  ;;  %v558_v30 = vadd.f32 %v2533_v50, %v2506_v35 }
  0xce   : > { %v538_v19 = vcombine.low %v531_v8, %v532_v9  ;;  %v537_v22 = vcombine.low %v529_v13, %v530_v4 }
  0xcf   : > { %v2546_v24 = vsel %vm567_vm7, %v1884_v18, %v1885_v55 }
  0xd0   : > { %v1888_v26 = vpop.permute.xlu1 %1887  ;;  %v542_v27 = vadd.f32 %v538_v19, %v494_v21  ;;  %v541_v1 = vadd.f32 %v537_v22, %v493_v20  ;;  %v576_v36 = vmul.f32 %v574_v25, %v2546_v24  ;;  %v2586_v22 = vpop.permute.xlu0 %729 }
  0xd1   : > { %v1890_v5 = vunpack.i.h.bf16 %v1888_v26  ;;  %v1889_v23 = vunpack.i.l.bf16 %v1888_v26  ;;  %2039 = vrot.lane.b32.xlu1 %v2312_v10, %s2172_s21  ;;  %s270_s21 = sand.u32 1, %s2123_s25  }
  0xd2   : > { %2048 = vset.pattern.permute.xlu1 %v2181_v46  ;;  %s1682_s13 = sshll.u32 %s270_s21, 4 }
  0xd3   : > { %v2557_v37 = vsel %vm567_vm7, %v1889_v23, %v1890_v5  ;;  %v2561_v38 = vsel %vm567_vm7, %v1885_v55, %v1889_v23  ;;  %v2565_v39 = vsel %vm567_vm7, %v1890_v5, %v1884_v18  ;;  %vm1175_vm7 = vcmp.lt.s32.totalorder %v2411_v45, 44 }
  0xd4   : > { %v577_v40 = vmul.f32 %v574_v25, %v2561_v38  ;;  %v578_v41 = vmul.f32 %v574_v25, %v2557_v37  ;;  %v579_v42 = vmul.f32 %v574_v25, %v2565_v39  ;;  %v1894_v44 = vpop.permute.xlu1 %1893  ;;  %v2573_v33 = vadd.f32 %v2561_v38, %v556_v28 }
  0xd5   : > { %v1896_v47 = vunpack.i.h.bf16 %v1894_v44  ;;  %v1895_v48 = vunpack.i.l.bf16 %v1894_v44  ;;  %v2576_v49 = vadd.f32 %v2557_v37, %v557_v29  ;;  %v2579_v51 = vadd.f32 %v2565_v39, %v558_v30  ;;  %1181 = vperm.xlu1 %2048, %v2284_v0   ;;  %v2594_v44 = vpop.permute.xlu0 %776 }
  0xd6   : > { %v584_v53 = vcombine.low %v576_v36, %v577_v40  ;;  %v585_v54 = vcombine.low %v578_v41, %v579_v42  ;;  %v555_v30 = vadd.f32 %v2521_v3, %v2511_v43 }
  0xd7   : > { %v617_v59 = vsel %vm614_vm8, %v1895_v48, %v1896_v47 }
  0xd8   : > { %v1899_v25 = vpop.permute.xlu1 %1898  ;;  %v589_v56 = vadd.f32 %v585_v54, %v542_v27  ;;  %v588_v57 = vadd.f32 %v584_v53, %v541_v1  ;;  %v623_v9 = vmul.f32 %v621_v17, %v617_v59  ;;  %v602_v54 = vadd.f32 %v2546_v24, %v555_v30 }
  0xd9   : > { %v1901_v60 = vunpack.i.h.bf16 %v1899_v25  ;;  %v1900_v61 = vunpack.i.l.bf16 %v1899_v25  ;;  %2051 = vrot.lane.b32.xlu1 %v2312_v10, %s2182_s19 }
  0xda   : > { %2067 = vset.pattern.permute.xlu1 %v2141_v14 }
  0xdb   : > { %v615_v52 = vsel %vm614_vm8, %v1900_v61, %v1901_v60  ;;  %v616_v4 = vsel %vm614_vm8, %v1896_v47, %v1900_v61  ;;  %v618_v8 = vsel %vm614_vm8, %v1901_v60, %v1895_v48  ;;  %v2605_v61 = vpop.permute.xlu0 %823  ;;  %vm1222_vm8 = vcmask 1041408  }
  0xdc   : > { %v624_v12 = vmul.f32 %v621_v17, %v616_v4  ;;  %v625_v13 = vmul.f32 %v621_v17, %v615_v52  ;;  %v626_v55 = vmul.f32 %v621_v17, %v618_v8  ;;  %v1905_v18 = vpop.permute.xlu1 %1904 }
  0xdd   : > { %v1907_v0 = vunpack.i.h.bf16 %v1905_v18  ;;  %v1906_v19 = vunpack.i.l.bf16 %v1905_v18  ;;  %2056 = vrot.lane.b32.xlu1 %v2317_v11, %s2182_s19  ;;  %s2188_s19 = smov 80  }
  0xde   : > { %v631_v20 = vcombine.low %v623_v9, %v624_v12  ;;  %v632_v21 = vcombine.low %v625_v13, %v626_v55 }
  0xdf   : > { %v648_v5 = vsel %vm645_vm9, %v1906_v19, %v1907_v0 }
  0xe0   : > { %v1910_v26 = vpop.permute.xlu1 %1909  ;;  %v636_v27 = vadd.f32 %v632_v21, %v589_v56  ;;  %v635_v1 = vadd.f32 %v631_v20, %v588_v57  ;;  %v654_v36 = vmul.f32 %v652_v7, %v648_v5 }
  0xe1   : > { %v1912_v23 = vunpack.i.h.bf16 %v1910_v26  ;;  %v1911_v28 = vunpack.i.l.bf16 %v1910_v26  ;;  %2062 = vrot.lane.b32.xlu1 %v2312_v10, %s2175_s16 }
  0xe3   : > { %v646_v17 = vsel %vm645_vm9, %v1911_v28, %v1912_v23  ;;  %v647_v14 = vsel %vm645_vm9, %v1907_v0, %v1911_v28  ;;  %v649_v29 = vsel %vm645_vm9, %v1912_v23, %v1906_v19  ;;  %v2637_v28 = vpop.permute.xlu0 %854  ;;  %vm1218_vm9 = vcmask 31744  }
  0xe4   : > { %v655_v40 = vmul.f32 %v652_v7, %v647_v14  ;;  %v656_v11 = vmul.f32 %v652_v7, %v646_v17  ;;  %v657_v41 = vmul.f32 %v652_v7, %v649_v29  ;;  %v1916_v42 = vpop.permute.xlu1 %1915 }
  0xe5   : > { %v1918_v46 = vunpack.i.h.bf16 %v1916_v42  ;;  %v1917_v47 = vunpack.i.l.bf16 %v1916_v42  ;;  %1171 = vrot.lane.b32.xlu1 %v2301_v6, %s2175_s16  ;;  %s3106_s16 = scalar_lea.vmem [#allocation2], %s1682_s13  ;;  %s2189_s13 = smov 72  }
  0xe6   : > { %v662_v48 = vcombine.low %v654_v36, %v655_v40  ;;  %v663_v53 = vcombine.low %v656_v11, %v657_v41 }
  0xe7   : > { %v2599_v25 = vsel %vm676_vm10, %v1917_v47, %v1918_v46 }
  0xe8   : > { %v1921_v10 = vpop.permute.xlu1 %1920  ;;  %v667_v56 = vadd.f32 %v663_v53, %v636_v27  ;;  %v666_v57 = vadd.f32 %v662_v48, %v635_v1  ;;  %v711_v7 = vadd.f32 %v2599_v25, %v602_v54  ;;  %v685_v52 = vmul.f32 %v683_v58, %v2599_v25 }
  0xe9   : > { %v1923_v59 = vunpack.i.h.bf16 %v1921_v10  ;;  %v1922_v60 = vunpack.i.l.bf16 %v1921_v10  ;;  %903 = vperm.xlu1 %2067, %v2387_v32   ;;  %v2665_v10 = vpop.permute.xlu0 %885 }
  0xeb   : > { %v2610_v4 = vsel %vm676_vm10, %v1922_v60, %v1923_v59  ;;  %v2614_v6 = vsel %vm676_vm10, %v1918_v46, %v1922_v60  ;;  %v2618_v8 = vsel %vm676_vm10, %v1923_v59, %v1917_v47  ;;  %vm1528_vm10 = vcmask 130048  }
  0xec   : > { %v686_v9 = vmul.f32 %v683_v58, %v2614_v6  ;;  %v687_v12 = vmul.f32 %v683_v58, %v2610_v4  ;;  %v688_v13 = vmul.f32 %v683_v58, %v2618_v8  ;;  %v1927_v55 = vpop.permute.xlu1 %1926  ;;  %v712_v18 = vadd.f32 %v2614_v6, %v2573_v33 }
  0xed   : > { %v1929_v0 = vunpack.i.h.bf16 %v1927_v55  ;;  %v1928_v19 = vunpack.i.l.bf16 %v1927_v55  ;;  %v713_v20 = vadd.f32 %v2610_v4, %v2576_v49  ;;  %v714_v21 = vadd.f32 %v2618_v8, %v2579_v51  ;;  %2068 = vset.pattern.permute.xlu1 %v2143_v15 }
  0xee   : > { %v693_v26 = vcombine.low %v685_v52, %v686_v9  ;;  %v694_v27 = vcombine.low %v687_v12, %v688_v13  ;;  %950 = vperm.xlu1 %2068, %v2387_v32  }
  0xef   : > { %v2632_v1 = vsel %vm723_vm11, %v1928_v19, %v1929_v0 }
  0xf0   : > { %v1932_v58 = vpop.permute.xlu1 %1931  ;;  %v698_v33 = vadd.f32 %v694_v27, %v667_v56  ;;  %v697_v5 = vadd.f32 %v693_v26, %v666_v57  ;;  %v758_v23 = vadd.f32 %v2632_v1, %v711_v7  ;;  %v732_v51 = vmul.f32 %v2586_v22, %v2632_v1 }
  0xf1   : > { %v1934_v49 = vunpack.i.h.bf16 %v1932_v58  ;;  %v1933_v17 = vunpack.i.l.bf16 %v1932_v58 }
  0xf2   : > { %2069 = vset.pattern.permute.xlu1 %v2144_v16 }
  0xf3   : > { %v2644_v14 = vsel %vm723_vm11, %v1933_v17, %v1934_v49  ;;  %v2648_v15 = vsel %vm723_vm11, %v1929_v0, %v1933_v17  ;;  %v2652_v29 = vsel %vm723_vm11, %v1934_v49, %v1928_v19  ;;  %997 = vperm.xlu1 %2069, %v2387_v32   ;;  %vm1534_vm11 = vcmask 261248  }
  0xf4   : > { %v733_v30 = vmul.f32 %v2586_v22, %v2648_v15  ;;  %v734_v36 = vmul.f32 %v2586_v22, %v2644_v14  ;;  %v735_v40 = vmul.f32 %v2586_v22, %v2652_v29  ;;  %v1938_v11 = vpop.permute.xlu1 %1937  ;;  %v759_v41 = vadd.f32 %v2648_v15, %v712_v18 }
  0xf5   : > { %v1940_v42 = vunpack.i.h.bf16 %v1938_v11  ;;  %v1939_v46 = vunpack.i.l.bf16 %v1938_v11  ;;  %v761_v47 = vadd.f32 %v2652_v29, %v714_v21  ;;  %v760_v48 = vadd.f32 %v2644_v14, %v713_v20  ;;  %v2697_v20 = vpop.permute.xlu0 %932 }
  0xf6   : > { %v740_v53 = vcombine.low %v732_v51, %v733_v30  ;;  %v741_v54 = vcombine.low %v734_v36, %v735_v40 }
  0xf7   : > { %v2669_v22 = vsel %vm770_vm12, %v1939_v46, %v1940_v42 }
  0xf8   : > { %v1943_v16 = vpop.permute.xlu1 %1942  ;;  %v745_v56 = vadd.f32 %v741_v54, %v698_v33  ;;  %v744_v57 = vadd.f32 %v740_v53, %v697_v5  ;;  %v2672_v7 = vadd.f32 %v2669_v22, %v758_v23  ;;  %v779_v60 = vmul.f32 %v2594_v44, %v2669_v22  ;;  %v1516_v54 = vld [vmem:[%s3189_s6] sm:$0xff] }
  0xf9   : > { %v1945_v32 = vunpack.i.h.bf16 %v1943_v16  ;;  %v1944_v59 = vunpack.i.l.bf16 %v1943_v16  ;;  %v2706_v36 = vpop.permute.xlu0 %979  ;;  %1519 = vperm.xlu0 %2070, %v1516_v54  }
  0xfa   : > { %3212 = vst [vmem:[#allocation5_spill] sm:$0xff] %v2672_v7 }
  0xfb   : > { %v2678_v52 = vsel %vm770_vm12, %v1944_v59, %v1945_v32  ;;  %v2682_v9 = vsel %vm770_vm12, %v1940_v42, %v1944_v59  ;;  %v2686_v12 = vsel %vm770_vm12, %v1945_v32, %v1939_v46  ;;  %vm1539_vm12 = vcmask 392448  }
  0xfc   : > { %v780_v13 = vmul.f32 %v2594_v44, %v2682_v9  ;;  %v781_v55 = vmul.f32 %v2594_v44, %v2678_v52  ;;  %v782_v18 = vmul.f32 %v2594_v44, %v2686_v12  ;;  %v1949_v0 = vpop.permute.xlu1 %1948  ;;  %v2695_v19 = vadd.f32 %v2682_v9, %v759_v41 }
  0xfd   : > { %v1951_v21 = vunpack.i.h.bf16 %v1949_v0  ;;  %v1950_v26 = vunpack.i.l.bf16 %v1949_v0  ;;  %v2700_v27 = vadd.f32 %v2686_v12, %v761_v47  ;;  %v2703_v58 = vadd.f32 %v2678_v52, %v760_v48 }
  0xfe   : > { %3213 = vst [vmem:[#allocation6_spill] sm:$0xff] %v2695_v19  ;;  %v787_v33 = vcombine.low %v779_v60, %v780_v13  ;;  %v788_v5 = vcombine.low %v781_v55, %v782_v18  ;;  %v2716_v55 = vpop.permute.xlu0 %1026 }
  0xff   : > { %3214 = vst [vmem:[#allocation7_spill] sm:$0xff] %v2700_v27  ;;  %3215 = vst [vmem:[#allocation8_spill] sm:$0xff] %v2703_v58  ;;  %v820_v17 = vsel %vm817_vm13, %v1950_v26, %v1951_v21 }
 0x100   : > { %v1954_v23 = vpop.permute.xlu1 %1953  ;;  %v791_v44 = vadd.f32 %v787_v33, %v744_v57  ;;  %v792_v49 = vadd.f32 %v788_v5, %v745_v56  ;;  %v826_v42 = vmul.f32 %v2605_v61, %v820_v17 }
 0x101   : > { %v1956_v51 = vunpack.i.h.bf16 %v1954_v23  ;;  %v1955_v30 = vunpack.i.l.bf16 %v1954_v23 }
 0x103   : > { %v818_v40 = vsel %vm817_vm13, %v1955_v30, %v1956_v51  ;;  %v819_v11 = vsel %vm817_vm13, %v1951_v21, %v1955_v30  ;;  %v821_v41 = vsel %vm817_vm13, %v1956_v51, %v1950_v26  ;;  %vm1544_vm13 = vcmask 523648  }
 0x104   : > { %v827_v46 = vmul.f32 %v2605_v61, %v819_v11  ;;  %v828_v47 = vmul.f32 %v2605_v61, %v818_v40  ;;  %v829_v48 = vmul.f32 %v2605_v61, %v821_v41  ;;  %v1960_v53 = vpop.permute.xlu1 %1959 }
 0x105   : > { %v1962_v16 = vunpack.i.h.bf16 %v1960_v53  ;;  %v1961_v56 = vunpack.i.l.bf16 %v1960_v53 }
 0x106   : > { %v834_v57 = vcombine.low %v826_v42, %v827_v46  ;;  %v835_v32 = vcombine.low %v828_v47, %v829_v48  ;;  %v3235_v45 = vld [vmem:[#allocation7_spill] sm:$0xff] }
 0x107   : > { %v851_v18 = vsel %vm848_vm14, %v1961_v56, %v1962_v16 }
 0x108   : > { %v1965_v59 = vpop.permute.xlu1 %1964  ;;  %v838_v60 = vadd.f32 %v834_v57, %v791_v44  ;;  %v839_v13 = vadd.f32 %v835_v32, %v792_v49  ;;  %v857_v5 = vmul.f32 %v2637_v28, %v851_v18  ;;  %v2722_v49 = vpop.permute.xlu0 %1057 }
 0x109   : > { %v1967_v0 = vunpack.i.h.bf16 %v1965_v59  ;;  %v1966_v61 = vunpack.i.l.bf16 %v1965_v59 }
 0x10b   : > { %v849_v21 = vsel %vm848_vm14, %v1966_v61, %v1967_v0  ;;  %v850_v26 = vsel %vm848_vm14, %v1962_v16, %v1966_v61  ;;  %v852_v33 = vsel %vm848_vm14, %v1967_v0, %v1961_v56  ;;  %vm1549_vm14 = vcmask 654848  }
 0x10c   : > { %v858_v23 = vmul.f32 %v2637_v28, %v850_v26  ;;  %v859_v17 = vmul.f32 %v2637_v28, %v849_v21  ;;  %v860_v51 = vmul.f32 %v2637_v28, %v852_v33  ;;  %v1971_v30 = vpop.permute.xlu1 %1970  ;;  %v2728_v47 = vpop.permute.xlu0 %1088 }
 0x10e   : > { %v865_v40 = vcombine.low %v857_v5, %v858_v23  ;;  %v866_v44 = vcombine.low %v859_v17, %v860_v51  ;;  %v1973_v5 = vunpack.i.h.bf16 %v1971_v30  ;;  %v1972_v17 = vunpack.i.l.bf16 %v1971_v30 }
 0x110   : > { %v1976_v11 = vpop.permute.xlu1 %1975  ;;  %v2724_v41 = vadd.f32 %v865_v40, %v838_v60  ;;  %v2726_v42 = vadd.f32 %v866_v44, %v839_v13  ;;  %v2730_v53 = vpop.permute.xlu0 %1119 }
 0x111   : > { %v1978_v61 = vunpack.i.h.bf16 %v1976_v11  ;;  %v1977_v21 = vunpack.i.l.bf16 %v1976_v11 }
 0x113   : > { %v2763_v51 = vsel %vm879_vm1, %v1977_v21, %v1978_v61  ;;  %v2767_v40 = vsel %vm879_vm1, %v1973_v5, %v1977_v21  ;;  %v2771_v33 = vsel %vm879_vm1, %v1978_v61, %v1972_v17 }
 0x114   : > { %v1982_v46 = vpop.permute.xlu1 %1981  ;;  %v2734_v16 = vpop.permute.xlu0 %2027  ;;  %3217 = vst [vmem:[#allocation10_spill] sm:$0xff] %v2763_v51  ;;  %3218 = vst [vmem:[#allocation11_spill] sm:$0xff] %v2767_v40  ;;  %v890_v7 = vmul.f32 %v2665_v10, %v2763_v51 }
 0x115   : > { %v3193_v60 = vunpack.i.h.bf16 %v2734_v16  ;;  %v3194_v13 = vunpack.i.l.bf16 %v2734_v16  ;;  %3219 = vst [vmem:[#allocation12_spill] sm:$0xff] %v2771_v33 }
 0x117   : > { %v1085_v23 = vsel %vm1082_vm15, %v3194_v13, %v3193_v60  ;;  %v1984_v60 = vunpack.i.h.bf16 %v1982_v46  ;;  %v1983_v13 = vunpack.i.l.bf16 %v1982_v46  ;;  %v2794_v46 = vsel %vm879_vm1, %v1972_v17, %v1973_v5 }
 0x118   : > { %v1987_v48 = vpop.permute.xlu1 %1986  ;;  %v2738_v56 = vpop.permute.xlu0 %1150  ;;  %v2777_v26 = vmul.f32 %v2728_v47, %v1085_v23  ;;  %3223 = vst [vmem:[#allocation14_spill] sm:$0xff] %v2794_v46  ;;  %v889_v23 = vmul.f32 %v2665_v10, %v2767_v40  ;;  %vm1564_vm1 = vcmask 917248  }
 0x119   : > { %3216 = vst [vmem:[#allocation9_spill] sm:$0xff] %v2738_v56  ;;  %v1989_v44 = vunpack.i.h.bf16 %v1987_v48  ;;  %v1988_v11 = vunpack.i.l.bf16 %v1987_v48  ;;  %v2819_v51 = vsel %vm926_vm2, %v1983_v13, %v1984_v60 }
 0x11a   : > { %3220 = vst [vmem:[#allocation13_spill] sm:$0xff] %v2777_v26 }
 0x11b   : > { %v2812_v5 = vsel %vm926_vm2, %v1989_v44, %v1983_v13 }
 0x11c   : > { %v2732_v54 = vpop.permute.xlu1 %1992  ;;  %v2742_v32 = vpop.permute.xlu0 %2044  ;;  %3226 = vst [vmem:[#allocation17_spill] sm:$0xff] %v2812_v5 }
 0x11d   : > { %v3221_v58 = vunpack.i.h.bf16 %v2742_v32  ;;  %v3222_v21 = vunpack.i.l.bf16 %v2742_v32  ;;  %v1994_v27 = vunpack.i.l.bf16 %v2732_v54 }
 0x11f   : > { %v2785_v48 = vsel %vm1113_vm0, %v3222_v21, %v3221_v58  ;;  %v891_v58 = vmul.f32 %v2665_v10, %v2771_v33  ;;  %v2804_v21 = vsel %vm926_vm2, %v1988_v11, %v1989_v44  ;;  %v1995_v33 = vunpack.i.h.bf16 %v2732_v54 }
 0x120   : > { %v2736_v28 = vpop.permute.xlu1 %1997  ;;  %v701_v18 = vpop.permute.xlu0 %700  ;;  %3224 = vst [vmem:[#allocation15_spill] sm:$0xff] %v2804_v21  ;;  %v888_v44 = vmul.f32 %v2665_v10, %v2794_v46  ;;  %v937_v54 = vmul.f32 %v2697_v20, %v2804_v21  ;;  %v935_v46 = vmul.f32 %v2697_v20, %v2819_v51 }
 0x121   : > { %v2790_v61 = vmul.f32 %v701_v18, %v2599_v25  ;;  %v2808_v25 = vsel %vm926_vm2, %v1984_v60, %v1988_v11  ;;  %v2815_v17 = vmul.f32 %v701_v18, %v2614_v6  ;;  %v2824_v19 = vmul.f32 %v701_v18, %v2610_v4 }
 0x122   : > { %3225 = vst [vmem:[#allocation16_spill] sm:$0xff] %v2808_v25  ;;  %v2827_v11 = vmul.f32 %v701_v18, %v2618_v8  ;;  %v1999_v6 = vunpack.i.l.bf16 %v2736_v28  ;;  %v936_v13 = vmul.f32 %v2697_v20, %v2808_v25  ;;  %v938_v4 = vmul.f32 %v2697_v20, %v2812_v5 }
 0x123   : > { %v896_v18 = vcombine.low %v888_v44, %v889_v23  ;;  %v897_v10 = vcombine.low %v890_v7, %v891_v58  ;;  %v2000_v25 = vunpack.i.h.bf16 %v2736_v28  ;;  %vm1569_vm2 = vcmask 1048448  }
 0x124   : > { %v2740_v57 = vpop.permute.xlu1 %2003  ;;  %v748_v2 = vpop.permute.xlu0 %747  ;;  %v2864_v20 = vsel %vm973_vm3, %v1995_v33, %v1999_v6 }
 0x125   : > { %v2833_v56 = vmul.f32 %v748_v2, %v2632_v1  ;;  %v2842_v8 = vmul.f32 %v748_v2, %v2648_v15  ;;  %v2848_v1 = vsel %vm973_vm3, %v1994_v27, %v1995_v33  ;;  %v2006_v26 = vunpack.i.h.bf16 %v2740_v57 }
 0x126   : > { %v2005_v21 = vunpack.i.l.bf16 %v2740_v57  ;;  %v2854_v5 = vmul.f32 %v748_v2, %v2644_v14  ;;  %v2857_v15 = vmul.f32 %v748_v2, %v2652_v29  ;;  %v943_v57 = vcombine.low %v935_v46, %v936_v13 }
 0x127   : > { %v944_v14 = vcombine.low %v937_v54, %v938_v4  ;;  %v2877_v2 = vmul.f32 %v2706_v36, %v2848_v1  ;;  %v900_v29 = vadd.f32 %v896_v18, %v2724_v41 }
 0x128   : > { %v2744_v59 = vpop.permute.xlu1 %2008  ;;  %v795_v60 = vpop.permute.xlu0 %794  ;;  %v1023_v33 = vsel %vm1020_vm4, %v2005_v21, %v2006_v26 }
 0x129   : > { %v2860_v7 = vmul.f32 %v795_v60, %v2669_v22  ;;  %v2867_v28 = vmul.f32 %v795_v60, %v2682_v9  ;;  %v2870_v58 = vmul.f32 %v795_v60, %v2678_v52  ;;  %v2873_v44 = vmul.f32 %v795_v60, %v2686_v12 }
 0x12a   : > { %v901_v22 = vadd.f32 %v897_v10, %v2726_v42  ;;  %v2883_v9 = vsel %vm973_vm3, %v1999_v6, %v2000_v25  ;;  %v2887_v52 = vsel %vm973_vm3, %v2000_v25, %v1994_v27  ;;  %v2891_v12 = vmul.f32 %v2706_v36, %v2864_v20 }
 0x12b   : > { %v2011_v27 = vunpack.i.h.bf16 %v2744_v59  ;;  %v2010_v25 = vunpack.i.l.bf16 %v2744_v59  ;;  %v2904_v13 = vadd.f32 %v943_v57, %v900_v29  ;;  %v2914_v4 = vmul.f32 %v2706_v36, %v2883_v9 }
 0x12c   : > { %v2748_v0 = vpop.permute.xlu1 %2014  ;;  %v2906_v54 = vadd.f32 %v944_v14, %v901_v22  ;;  %v2918_v59 = vmul.f32 %v2706_v36, %v2887_v52  ;;  %v990_v18 = vcombine.low %v2877_v2, %v2891_v12  ;;  %v2923_v10 = vmul.f32 %v2716_v55, %v1023_v33 }
 0x12d   : > { %v1021_v29 = vsel %vm1020_vm4, %v2010_v25, %v2011_v27  ;;  %v1022_v2 = vsel %vm1020_vm4, %v2006_v26, %v2010_v25  ;;  %v1024_v22 = vsel %vm1020_vm4, %v2011_v27, %v2005_v21 }
 0x130   : > { %v2774_v30 = vpop.permute.xlu1 %2019 }
 0x131   : > { %v2021_v12 = vunpack.i.l.bf16 %v2774_v30 }
 0x13b   : > { %v498_v40 = vpop.permute.xlu1 %497 }
 0x140   : > { %v545_v23 = vpop.permute.xlu1 %544 }
 0x141   : > { %v547_v46 = vmul.f32 %v545_v23, %v2521_v3  ;;  %v548_v41 = vmul.f32 %v545_v23, %v2529_v63  ;;  %v549_v42 = vmul.f32 %v545_v23, %v2525_v62  ;;  %v550_v6 = vmul.f32 %v545_v23, %v2533_v50 }
 0x142   : > { %v500_v3 = vmul.f32 %v498_v40, %v2511_v43  ;;  %v501_v63 = vmul.f32 %v498_v40, %v2502_v34  ;;  %v502_v62 = vmul.f32 %v498_v40, %v2498_v31  ;;  %v503_v50 = vmul.f32 %v498_v40, %v2506_v35 }
 0x144   : > { %v2899_v60 = vpop.permute.xlu1 %2032  ;;  %v551_v43 = vadd.f32 %v547_v46, %v500_v3  ;;  %v552_v34 = vadd.f32 %v548_v41, %v501_v63  ;;  %v553_v23 = vadd.f32 %v549_v42, %v502_v62  ;;  %v554_v31 = vadd.f32 %v550_v6, %v503_v50 }
 0x145   : > { %v2035_v42 = vunpack.i.h.bf16 %v2899_v60  ;;  %v1030_v3 = vmul.f32 %v2716_v55, %v1022_v2  ;;  %v1031_v63 = vmul.f32 %v2716_v55, %v1021_v29 }
 0x147   : > { %v1037_v29 = vcombine.low %v2923_v10, %v1030_v3 }
 0x148   : > { %v592_v57 = vpop.permute.xlu1 %591 }
 0x149   : > { %v594_v35 = vmul.f32 %v592_v57, %v2546_v24  ;;  %v595_v40 = vmul.f32 %v592_v57, %v2561_v38  ;;  %v596_v14 = vmul.f32 %v592_v57, %v2557_v37  ;;  %v597_v36 = vmul.f32 %v592_v57, %v2565_v39 }
 0x14a   : > { %v2017_v38 = vunpack.i.h.bf16 %v2748_v0  ;;  %v2016_v37 = vunpack.i.l.bf16 %v2748_v0  ;;  %v2022_v39 = vunpack.i.h.bf16 %v2774_v30  ;;  %v2034_v30 = vunpack.i.l.bf16 %v2899_v60 }
 0x14b   : > { %v598_v33 = vadd.f32 %v594_v35, %v551_v43  ;;  %v599_v46 = vadd.f32 %v595_v40, %v552_v34  ;;  %v600_v24 = vadd.f32 %v596_v14, %v553_v23  ;;  %v601_v41 = vadd.f32 %v597_v36, %v554_v31 }
 0x14c   : > { %v2040_v6 = vpop.permute.xlu1 %2039  ;;  %v1053_v0 = vsel %vm1051_vm5, %v2017_v38, %v2021_v12  ;;  %v1052_v43 = vsel %vm1051_vm5, %v2021_v12, %v2022_v39  ;;  %v1055_v34 = vsel %vm1051_vm5, %v2022_v39, %v2016_v37  ;;  %v991_v40 = vcombine.low %v2914_v4, %v2918_v59 }
 0x14d   : > { %v707_v26 = vadd.f32 %v2790_v61, %v598_v33  ;;  %v708_v25 = vadd.f32 %v2815_v17, %v599_v46  ;;  %v709_v21 = vadd.f32 %v2824_v19, %v600_v24  ;;  %v710_v27 = vadd.f32 %v2827_v11, %v601_v41 }
 0x14e   : > { %v1032_v19 = vmul.f32 %v2716_v55, %v1024_v22  ;;  %v1054_v11 = vsel %vm1051_vm5, %v2016_v37, %v2017_v38  ;;  %v2041_v23 = vunpack.i.l.bf16 %v2040_v6  ;;  %v1083_v36 = vsel %vm1082_vm15, %v2034_v30, %v2035_v42 }
 0x14f   : > { %v754_v62 = vadd.f32 %v2833_v56, %v707_v26  ;;  %v755_v50 = vadd.f32 %v2842_v8, %v708_v25  ;;  %v756_v61 = vadd.f32 %v2854_v5, %v709_v21  ;;  %v757_v17 = vadd.f32 %v2857_v15, %v710_v27  ;;  %v3231_v27 = vld [vmem:[#allocation13_spill] sm:$0xff] }
 0x150   : > { %v2960_v60 = vpop.permute.xlu1 %1181  ;;  %v1061_v56 = vmul.f32 %v2722_v49, %v1053_v0  ;;  %v3227_v5 = vunpack.i.l.bf16 %v2734_v16  ;;  %v2042_v8 = vunpack.i.h.bf16 %v2040_v6  ;;  %v1060_v14 = vmul.f32 %v2722_v49, %v1054_v11 }
 0x151   : > { %v2969_v15 = vadd.f32 %v2860_v7, %v754_v62  ;;  %v2972_v31 = vadd.f32 %v2867_v28, %v755_v50  ;;  %v2975_v57 = vadd.f32 %v2870_v58, %v756_v61  ;;  %v2978_v35 = vadd.f32 %v2873_v44, %v757_v17 }
 0x152   : > { %v1086_v55 = vsel %vm1082_vm15, %v2035_v42, %v3227_v5  ;;  %v3228_v7 = vunpack.i.h.bf16 %v2734_v16  ;;  %v1062_v58 = vmul.f32 %v2722_v49, %v1052_v43  ;;  %v1063_v44 = vmul.f32 %v2722_v49, %v1055_v34  ;;  %v1174_v43 = vpop.permute.xlu0 %1173 }
 0x153   : > { %v994_v22 = vadd.f32 %v990_v18, %v2904_v13  ;;  %v1038_v4 = vcombine.low %v1031_v63, %v1032_v19  ;;  %v1068_v59 = vcombine.low %v1060_v14, %v1061_v56  ;;  %v1094_v12 = vmul.f32 %v2728_v47, %v1086_v55 }
 0x154   : > { %v1084_v28 = vsel %vm1082_vm15, %v3228_v7, %v2034_v30  ;;  %v2052_v2 = vpop.permute.xlu1 %2051  ;;  %v3229_v33 = vunpack.i.l.bf16 %v2742_v32  ;;  %v1093_v10 = vmul.f32 %v2728_v47, %v1083_v36  ;;  %v1116_v24 = vsel %vm1113_vm0, %v2041_v23, %v2042_v8 }
 0x155   : > { %v1092_v46 = vmul.f32 %v2728_v47, %v1084_v28  ;;  %v3230_v49 = vunpack.i.h.bf16 %v2742_v32  ;;  %v1124_v18 = vmul.f32 %v2730_v53, %v2785_v48  ;;  %v2054_v41 = vunpack.i.h.bf16 %v2052_v2 }
 0x156   : > { %v1115_v16 = vsel %vm1113_vm0, %v2042_v8, %v3229_v33  ;;  %v2053_v38 = vunpack.i.l.bf16 %v2052_v2  ;;  %v1069_v37 = vcombine.low %v1062_v58, %v1063_v44  ;;  %v1041_v47 = vadd.f32 %v1037_v29, %v994_v22 }
 0x157   : > { %v1117_v13 = vsel %vm1113_vm0, %v3230_v49, %v2041_v23  ;;  %v1123_v39 = vmul.f32 %v2730_v53, %v1115_v16  ;;  %v995_v6 = vadd.f32 %v991_v40, %v2906_v54  ;;  %v1122_v26 = vmul.f32 %v2730_v53, %v1116_v24 }
 0x158   : > { %v2057_v42 = vpop.permute.xlu1 %2056  ;;  %v1125_v32 = vmul.f32 %v2730_v53, %v1117_v13  ;;  %v1099_v3 = vcombine.low %v3231_v27, %v1092_v46  ;;  %v1100_v48 = vcombine.low %v1093_v10, %v1094_v12  ;;  %v1072_v63 = vadd.f32 %v1068_v59, %v1041_v47  ;;  %v3232_v53 = vld [vmem:[#allocation9_spill] sm:$0xff]  ;;  %v3238_v47 = vld [vmem:[#allocation14_spill] sm:$0xff] }
 0x159   : > { %v2059_v25 = vunpack.i.h.bf16 %v2057_v42  ;;  %v2058_v21 = vunpack.i.l.bf16 %v2057_v42  ;;  %v1042_v0 = vadd.f32 %v1038_v4, %v995_v6  ;;  %v1147_v30 = vsel %vm1144_vm6, %v2053_v38, %v2054_v41  ;;  %v3237_v42 = vld [vmem:[#allocation5_spill] sm:$0xff] }
 0x15a   : > { %v1130_v56 = vcombine.low %v1122_v26, %v1123_v39  ;;  %v1131_v5 = vcombine.low %v1124_v18, %v1125_v32  ;;  %v1153_v23 = vmul.f32 %v3232_v53, %v1147_v30  ;;  %v1103_v36 = vadd.f32 %v1099_v3, %v1072_v63  ;;  %v3233_v18 = vld [vmem:[#allocation6_spill] sm:$0xff]  ;;  %v3241_v3 = vld [vmem:[#allocation16_spill] sm:$0xff]  ;;  %v3242_v63 = vld [vmem:[#allocation17_spill] sm:$0xff] }
 0x15b   : > { %v1145_v62 = vsel %vm1144_vm6, %v2058_v21, %v2059_v25  ;;  %v1146_v54 = vsel %vm1144_vm6, %v2054_v41, %v2058_v21  ;;  %v1148_v50 = vsel %vm1144_vm6, %v2059_v25, %v2053_v38  ;;  %v1073_v34 = vadd.f32 %v1069_v37, %v1042_v0  ;;  %v3234_v41 = vld [vmem:[#allocation11_spill] sm:$0xff]  ;;  %v3236_v37 = vld [vmem:[#allocation12_spill] sm:$0xff]  ;;  %v3240_v21 = vld [vmem:[#allocation10_spill] sm:$0xff] }
 0x15c   : > { %v1154_v61 = vmul.f32 %v3232_v53, %v1146_v54  ;;  %v1155_v17 = vmul.f32 %v3232_v53, %v1145_v62  ;;  %v1156_v19 = vmul.f32 %v3232_v53, %v1148_v50  ;;  %v2063_v11 = vpop.permute.xlu1 %2062  ;;  %v1134_v22 = vadd.f32 %v1130_v56, %v1103_v36  ;;  %v3239_v25 = vld [vmem:[#allocation8_spill] sm:$0xff] }
 0x15d   : > { %v2065_v55 = vunpack.i.h.bf16 %v2063_v11  ;;  %v2064_v8 = vunpack.i.l.bf16 %v2063_v11  ;;  %v1104_v7 = vadd.f32 %v1100_v48, %v1073_v34  ;;  %v915_v38 = vadd.f32 %v3234_v41, %v3233_v18 }
 0x15e   : > { %v1161_v29 = vcombine.low %v1153_v23, %v1154_v61  ;;  %v1162_v58 = vcombine.low %v1155_v17, %v1156_v19  ;;  %v917_v39 = vadd.f32 %v3236_v37, %v3235_v45  ;;  %v914_v6 = vadd.f32 %v3238_v47, %v3237_v42 }
 0x15f   : > { %v1179_v40 = vsel %vm1175_vm7, %v1174_v43, %v2064_v8  ;;  %v1178_v14 = vsel %vm1175_vm7, %v2064_v8, %v2065_v55  ;;  %v1135_v4 = vadd.f32 %v1131_v5, %v1104_v7  ;;  %v962_v48 = vadd.f32 %v3241_v3, %v915_v38 }
 0x160   : > { %v1172_v28 = vpop.permute.xlu1 %1171  ;;  %v1187_v59 = vmul.f32 %v2960_v60, %v1179_v40  ;;  %v1184_v12 = vmul.f32 %v2960_v60, %v1178_v14  ;;  %v1165_v49 = vadd.f32 %v1161_v29, %v1134_v22  ;;  %v964_v0 = vadd.f32 %v3242_v63, %v917_v39 }
 0x161   : > { %v1176_v44 = vsel %vm1175_vm7, %v1172_v28, %v1174_v43  ;;  %v1177_v2 = vsel %vm1175_vm7, %v2065_v55, %v1172_v28  ;;  %v1166_v13 = vadd.f32 %v1162_v58, %v1135_v4  ;;  %v961_v30 = vadd.f32 %v2819_v51, %v914_v6  ;;  %v3243_v43 = vld [vmem:[#allocation15_spill] sm:$0xff] }
 0x162   : > { %v1185_v33 = vmul.f32 %v2960_v60, %v1177_v2  ;;  %v1186_v16 = vmul.f32 %v2960_v60, %v1176_v44  ;;  %v916_v60 = vadd.f32 %v3240_v21, %v3239_v25  ;;  %v1009_v14 = vadd.f32 %v2864_v20, %v962_v48 }
 0x163   : > { %v1008_v8 = vadd.f32 %v2848_v1, %v961_v30  ;;  %v1011_v36 = vadd.f32 %v2887_v52, %v964_v0  ;;  %v3244_v45 = vmov 0   ;;  %vm1554_vm15 = vcmask 786048  }
 0x164   : > { %v1192_v46 = vcombine.low %v1184_v12, %v1185_v33  ;;  %v1193_v10 = vcombine.low %v1186_v16, %v1187_v59  ;;  %v904_v24 = vpop.permute.xlu1 %903  ;;  %v963_v34 = vadd.f32 %v3243_v43, %v916_v60  ;;  %v1199_v18 = vmul.f32 0.11111111, %v1009_v14 }
 0x165   : > { %v906_v27 = vmul.f32 %v904_v24, %v3238_v47  ;;  %v907_v62 = vmul.f32 %v904_v24, %v3234_v41  ;;  %v909_v54 = vmul.f32 %v904_v24, %v3236_v37  ;;  %v908_v61 = vmul.f32 %v904_v24, %v3240_v21 }
 0x166   : > { %v1196_v26 = vadd.f32 %v1192_v46, %v1165_v49  ;;  %v1197_v32 = vadd.f32 %v1193_v10, %v1166_v13  ;;  %v1010_v22 = vadd.f32 %v2883_v9, %v963_v34  ;;  %v1198_v10 = vmul.f32 0.11111111, %v1008_v8 }
 0x167   : > { %v910_v7 = vadd.f32 %v906_v27, %v2969_v15  ;;  %v911_v28 = vadd.f32 %v907_v62, %v2972_v31  ;;  %v913_v29 = vadd.f32 %v909_v54, %v2978_v35  ;;  %v912_v58 = vadd.f32 %v908_v61, %v2975_v57  ;;  %v1207_v57 = vld [vmem:[%s3187_s4] sm:$0xf] }
 0x168   : > { %v1210_v50 = vcombine.high %v1196_v26, %v1196_v26  ;;  %v1211_v53 = vcombine.high %v1197_v32, %v1197_v32  ;;  %v1214_v19 = vpack.c.bf16 %v1196_v26, %v1196_v26  ;;  %v1216_v11 = vpack.c.bf16 %v1197_v32, %v1197_v32  ;;  %v1202_v32 = vld [vmem:[%s3186_s3] sm:$0xf] }
 0x169   : > { %v951_v17 = vpop.permute.xlu1 %950  ;;  %v1201_v38 = vmul.f32 0.11111111, %v1011_v36  ;;  %v1414_v42 = vpack.c.bf16 %v1199_v18, %v1199_v18  ;;  %v1413_v47 = vpack.c.bf16 %v1198_v10, %v1198_v10  ;;  %v1412_v27 = vld [vmem:[%s3188_s5] sm:$0xf]  ;;  %vm1561_vm0 = vcmask 850944  }
 0x16a   : > { %v953_v56 = vmul.f32 %v951_v17, %v2819_v51  ;;  %v954_v5 = vmul.f32 %v951_v17, %v3241_v3  ;;  %v956_v55 = vmul.f32 %v951_v17, %v3242_v63  ;;  %v1215_v23 = vpack.c.bf16 %v1210_v50, %v1210_v50 }
 0x16b   : > { %v1217_v40 = vpack.c.bf16 %v1211_v53, %v1211_v53  ;;  %v955_v51 = vmul.f32 %v951_v17, %v3243_v43  ;;  %v1224_v44 = vsel %vm1222_vm8, %v1214_v19, 0  ;;  %v1230_v2 = vsel %vm1222_vm8, %v1216_v11, 0 }
 0x16c   : > { %1685 = vmatprep.subr.msk.bf16.mxu0 %vm1222_vm8, %v1215_v23  ;;  %v957_v4 = vadd.f32 %v953_v56, %v910_v7  ;;  %v958_v15 = vadd.f32 %v954_v5, %v911_v28  ;;  %v960_v59 = vadd.f32 %v956_v55, %v913_v29  ;;  %v1416_v26 = vpack.c.bf16 %v1201_v38, %v1201_v38 }
 0x16d   : > { %1687 = vmatprep.subr.msk.bf16.mxu1 %vm1222_vm8, %v1217_v40  ;;  %1250 = vmatpush1.bf16.msra.mxu0 %v1224_v44  ;;  %v959_v46 = vadd.f32 %v955_v51, %v912_v58  ;;  %v1421_v21 = vsel %vm1222_vm8, %v1413_v47, 0 }
 0x16e   : > { %1291 = vmatpush1.bf16.msra.mxu1 %v1230_v2  ;;  %v998_v31 = vpop.permute.xlu1 %997 }
 0x16f   : > { %v1000_v35 = vmul.f32 %v998_v31, %v2848_v1  ;;  %v1001_v12 = vmul.f32 %v998_v31, %v2864_v20  ;;  %v1002_v33 = vmul.f32 %v998_v31, %v2883_v9  ;;  %v1003_v16 = vmul.f32 %v998_v31, %v2887_v52 }
 0x170   : > { %1686 = vmatmul.mubr.msk.bf16.vlgmr.msra.gmra.mxu0 %vm1218_vm9, %v1207_v57  ;;  %v1200_v1 = vmul.f32 0.11111111, %v1010_v22 }
 0x171   : > { %v1005_v24 = vadd.f32 %v1001_v12, %v958_v15  ;;  %v1007_v49 = vadd.f32 %v1003_v16, %v960_v59  ;;  %1688 = vmatmul.mubr.msk.bf16.vlgmr.msra.gmra.mxu1 %vm1218_vm9, %v1207_v57  ;;  %v1004_v13 = vadd.f32 %v1000_v35, %v957_v4  ;;  %v1006_v41 = vadd.f32 %v1002_v33, %v959_v46 }
 0x172   : > { %1363 = vmatprep.mubr.bf16.mxu0 %v3244_v45  ;;  %1404 = vmatprep.mubr.bf16.mxu1 %v3244_v45  ;;  %v1415_v25 = vpack.c.bf16 %v1200_v1, %v1200_v1 }
 0x173   : > { %v1204_v20 = vpack.c.bf16 %v1005_v24, %v1005_v24  ;;  %v1206_v9 = vpack.c.bf16 %v1007_v49, %v1007_v49  ;;  %v1203_v52 = vpack.c.bf16 %v1004_v13, %v1004_v13  ;;  %v1205_v37 = vpack.c.bf16 %v1006_v41, %v1006_v41 }
 0x174   : > { %v1427_v60 = vsel %vm1222_vm8, %v1415_v25, 0  ;;  %v1520_v23 = vpop.permute.xlu0 %1519 }
 0x175   : > { %1689 = vmatprep.subr.msk.bf16.mxu0 %vm1222_vm8, %v1204_v20  ;;  %1691 = vmatprep.subr.msk.bf16.mxu1 %vm1222_vm8, %v1206_v9  ;;  %v1320_v39 = vsel %vm1222_vm8, %v1203_v52, 0  ;;  %v1326_v6 = vsel %vm1222_vm8, %v1205_v37, 0 }
 0x176   : > { %1346 = vmatpush1.bf16.msra.mxu0 %v1320_v39  ;;  %1387 = vmatpush1.bf16.msra.mxu1 %v1326_v6 }
 0x177   : > { %1693 = vmatprep.subr.msk.bf16.mxu0 %vm1222_vm8, %v1414_v42  ;;  %1695 = vmatprep.subr.msk.bf16.mxu1 %vm1222_vm8, %v1416_v26 }
 0x179   : > { %1690 = vmatmul.mubr.msk.bf16.vlgmr.msra.gmra.mxu0 %vm1218_vm9, %v1202_v32  ;;  %1692 = vmatmul.mubr.msk.bf16.vlgmr.msra.gmra.mxu1 %vm1218_vm9, %v1202_v32 }
 0x17a   : > { %1447 = vmatpush1.bf16.msra.mxu0 %v1421_v21  ;;  %1488 = vmatpush1.bf16.msra.mxu1 %v1427_v60 }
 0x17b   : > { %1464 = vmatprep.mubr.bf16.mxu0 %v3244_v45  ;;  %1505 = vmatprep.mubr.bf16.mxu1 %v3244_v45 }
 0x181   : > { %1694 = vmatmul.mubr.msk.bf16.vlgmr.msra.gmra.mxu0 %vm1218_vm9, %v1412_v27  ;;  %1696 = vmatmul.mubr.msk.bf16.vlgmr.msra.gmra.mxu1 %vm1218_vm9, %v1412_v27 }
 0x230   : > { %v1269_v3 = vpop.f32.mrf.mxu0 }
 0x231   : > { %v1310_v48 = vpop.f32.mrf.mxu1 }
 0x232   : > { %v1271_v63 = vpop.f32.mrf.mxu0 }
 0x233   : > { %v1312_v0 = vpop.f32.mrf.mxu1 }
 0x234   : > { %v1273_v30 = vpop.f32.mrf.mxu0 }
 0x235   : > { %v1313_v62 = vpop.f32.mrf.mxu1 }
 0x236   : > { %v1274_v54 = vpop.f32.mrf.mxu0 }
 0x237   : > { %v1314_v50 = vpop.f32.mrf.mxu1 }
 0x239   : > { %v1365_v53 = vpop.f32.mrf.mxu0  ;;  %v1406_v61 = vpop.f32.mrf.mxu1 }
 0x23a   : > { %v1366_v56 = vadd.f32 %v1365_v53, %v1269_v3  ;;  %v1407_v55 = vadd.f32 %v1406_v61, %v1310_v48 }
 0x23b   : > { %v1367_v17 = vpop.f32.mrf.mxu0  ;;  %v1408_v19 = vpop.f32.mrf.mxu1 }
 0x23c   : > { %v1368_v28 = vadd.f32 %v1367_v17, %v1271_v63 }
 0x23d   : > { %v1369_v11 = vpop.f32.mrf.mxu0  ;;  %v1409_v43 = vpop.f32.mrf.mxu1 }
 0x23f   : > { %v1370_v34 = vpop.f32.mrf.mxu0  ;;  %v1410_v5 = vpop.f32.mrf.mxu1 }
 0x241   : > { %v1466_v8 = vpop.f32.mrf.mxu0  ;;  %v1507_v14 = vpop.f32.mrf.mxu1 }
 0x242   : > { %v1513_v40 = vadd.f32 %v1466_v8, %v1366_v56  ;;  %v1515_v7 = vadd.f32 %v1507_v14, %v1407_v55 }
 0x243   : > { %v1468_v36 = vpop.f32.mrf.mxu0  ;;  %v1509_v51 = vpop.f32.mrf.mxu1 }
 0x244   : > { %v1522_v29 = vadd.f32 %v1520_v23, %v1513_v40  ;;  %v1514_v2 = vadd.f32 %v1468_v36, %v1368_v28  ;;  %v1524_v22 = vadd.f32 %v1520_v23, %v1515_v7 }
 0x245   : > { %v1470_v58 = vpop.f32.mrf.mxu0  ;;  %v1510_v4 = vpop.f32.mrf.mxu1 }
 0x246   : > { %v1525_v44 = vmax.f32 %v1522_v29, 0.0  ;;  %v1523_v31 = vadd.f32 %v1520_v23, %v1514_v2  ;;  %v1527_v57 = vmax.f32 %v1524_v22, 0.0 }
 0x247   : > { %v1471_v15 = vpop.f32.mrf.mxu0  ;;  %v1511_v59 = vpop.f32.mrf.mxu1 }
 0x248   : > { %1557 = vrot.lane.b32.xlu0 %v1525_v44, %s2158_s14  ;;  %1531 = vrot.lane.b32.xlu1 %v1525_v44, %s2145_s23  ;;  %1529 = vst.msk [vmem:[%s3106_s16] sm:$0xff] %vm1528_vm10, %v1525_v44  ;;  %v1526_v35 = vmax.f32 %v1523_v31, 0.0  ;;  %s2187_s23 = smov 112  }
 0x24c   : > { %1592 = vrot.lane.b32.xlu0 %v1527_v57, %s2183_s17  ;;  %1536 = vrot.lane.b32.xlu1 %v1525_v44, %s2184_s18  ;;  %s2190_s17 = smov 100   ;;  %s2191_s18 = smov 96  }
 0x250   : > { %1575 = vrot.lane.b32.xlu0 %v1526_v35, %s2185_s22  ;;  %1541 = vrot.lane.b32.xlu1 %v1525_v44, %s2186_s8  ;;  %s2192_s8 = smov [#allocation2]  }
 0x254   : > { %1579 = vrot.lane.b32.xlu0 %v1526_v35, %s2161_s15  ;;  %1546 = vrot.lane.b32.xlu1 %v1525_v44, %s2187_s23  ;;  %s2075_s23 = sshll.u32 %s2192_s8, 4  ;;  %s2076_s23 = int_to_ptr.vmem [resolvable:$false] %s2075_s23 }
 0x258   : > { %1583 = vrot.lane.b32.xlu0 %v1526_v35, %s2171_s20  ;;  %1551 = vrot.lane.b32.xlu1 %v1525_v44, %s2148_s29  ;;  %s1702_s29 = sshll.u32 %s2254_s28, 8  ;;  %s1605_s28 = scalar_lea.sflag [#allocation3], %s270_s21 }
 0x25c   : > { %1587 = vrot.lane.b32.xlu0 %v1526_v35, %s2188_s19  ;;  %1596 = vrot.lane.b32.xlu1 %v1527_v57, %s2189_s13  ;;  %s2077_s19 = scalar_lea.vmem %s2076_s23, 512 }
 0x260   : > { %1566 = vrot.lane.b32.xlu0 %v1526_v35, %s2190_s17  ;;  %1571 = vrot.lane.b32.xlu1 %v1526_v35, %s2191_s18 }
 0x264   : > { %1559 = vrot.lane.b32.xlu1 %v1526_v35, %s2158_s14  ;;  %s1619_s14 = sshll.u32 %s3106_s16, 4  ;;  %s1620_s14 = int_to_ptr.vmem [resolvable:$true] %s1619_s14 }
 0x265   : > { %s2071_s22 = scalar_lea.vmem %s1620_s14, 256  ;;  %p2078_p0 = scmp.lt.s32.totalorder %s1620_s14, %s2076_s23 }
 0x266   : > { %p2072_p11 = scmp.ne.s32.totalorder %s1620_s14, %s2071_s22  ;;  %p2079_p1 = scmp.lt.s32.totalorder %s2077_s19, %s2071_s22 }
 0x268   : > { %1600 = vrot.lane.b32.xlu1 %v1527_v57, %s2173_s9  ;;  %s3145_s9 = scalar_lea.hbm %s3190_s7, %s1702_s29  ;;  %p2073_p12 = pnand %p2072_p11, %p2271_p5 }
 0x269   : > { %p2080_p2 = por %p2079_p1, %p2078_p0 }
 0x26a   : > { %p2074_p13 = pneg %p2073_p12 }
 0x26c   : > { %p2081_p3 = pnand %p2080_p2, %p2074_p13 }
 0x2ba   : > { %v1558_v12 = vpop.permute.xlu0 %1557  ;;  %v1532_v33 = vpop.permute.xlu1 %1531 }
 0x2bb   : > { %1535 = vst.msk [vmem:[%s3106_s16] sm:$0xff] %vm1534_vm11, %v1532_v33 }
 0x2be   : > { %v1593_v16 = vpop.permute.xlu0 %1592  ;;  %v1537_v46 = vpop.permute.xlu1 %1536 }
 0x2bf   : > { %1540 = vst.msk [vmem:[%s3106_s16] sm:$0xff] %vm1539_vm12, %v1537_v46 }
 0x2c2   : > { %v1576_v10 = vpop.permute.xlu0 %1575  ;;  %v1542_v24 = vpop.permute.xlu1 %1541 }
 0x2c3   : > { %1545 = vst.msk [vmem:[%s3106_s16] sm:$0xff] %vm1544_vm13, %v1542_v24 }
 0x2c6   : > { %v1580_v49 = vpop.permute.xlu0 %1579  ;;  %v1547_v13 = vpop.permute.xlu1 %1546 }
 0x2c7   : > { %1550 = vst.msk [vmem:[%s3106_s16] sm:$0xff] %vm1549_vm14, %v1547_v13 }
 0x2ca   : > { %v1552_v18 = vpop.permute.xlu1 %1551  ;;  %v1584_v41 = vpop.permute.xlu0 %1583 }
 0x2cb   : > { %1555 = vst.msk [vmem:[%s3106_s16] sm:$0xff] %vm1554_vm15, %v1552_v18 }
 0x2ce   : > { %v1597_v38 = vpop.permute.xlu1 %1596  ;;  %v1588_v45 = vpop.permute.xlu0 %1587 }
 0x2d2   : > { %v1572_v1 = vpop.permute.xlu1 %1571  ;;  %v1567_v52 = vpop.permute.xlu0 %1566 }
 0x2d3   : > { %1574 = vst.msk [vmem:[%s3106_s16 + $0x8] sm:$0xff] %vm1528_vm10, %v1572_v1 }
 0x2d4   : > { %1578 = vst.msk [vmem:[%s3106_s16 + $0x8] sm:$0xff] %vm1534_vm11, %v1576_v10 }
 0x2d5   : > { %1582 = vst.msk [vmem:[%s3106_s16 + $0x8] sm:$0xff] %vm1539_vm12, %v1580_v49 }
 0x2d6   : > { %1586 = vst.msk [vmem:[%s3106_s16 + $0x8] sm:$0xff] %vm1544_vm13, %v1584_v41  ;;  %v1560_v20 = vpop.permute.xlu1 %1559 }
 0x2d7   : > { %1590 = vst.msk [vmem:[%s3106_s16 + $0x8] sm:$0xff] %vm1549_vm14, %v1588_v45  ;;  %v1562_v9 = vsel %vm1561_vm0, %v1558_v12, %v1560_v20 }
 0x2d8   : > { %1565 = vst.msk [vmem:[%s3106_s16] sm:$0xff] %vm1564_vm1, %v1562_v9 }
 0x2d9   : > { %1595 = vst.msk [vmem:[%s3106_s16 + $0x8] sm:$0xff] %vm1554_vm15, %v1593_v16 }
 0x2da   : > { %1599 = vst.msk [vmem:[%s3106_s16 + $0x8] sm:$0xff] %vm1564_vm1, %v1597_v38  ;;  %v1601_v37 = vpop.permute.xlu1 %1600 }
 0x2db   : > { %1570 = vst.msk [vmem:[%s3106_s16] sm:$0xff] %vm1569_vm2, %v1567_v52  ;;  %1603 = vst.msk [vmem:[%s3106_s16 + $0x8] sm:$0xff] %vm1569_vm2, %v1601_v37 }
 0x2dc   : > { %2084 = shalt.err (!%p2081_p3)
}
 0x2dd   : > { %s2085_s16 = scalar_lea.hbm %s3145_s9, 256  ;;  %s2089_s17 = scalar_lea.hbm %s3190_s7, 512 }
 0x2de   : > { %p2086_p4 = scmp.ne.s32.totalorder %s3145_s9, %s2085_s16  ;;  %p2090_p9 = scmp.lt.s32.totalorder %s3145_s9, %s3190_s7 }
 0x2df   : > { %p2091_p10 = scmp.lt.s32.totalorder %s2089_s17, %s2085_s16 }
 0x2e0   : > { %p2087_p7 = pnand %p2086_p4, %p2271_p5 }
 0x2e1   : > { %p2092_p11 = por %p2091_p10, %p2090_p9 }
 0x2e2   : > { %p2088_p8 = pneg %p2087_p7 }
 0x2e4   : > { %p2093_p12 = pnand %p2092_p11, %p2088_p8 }
 0x2e6   : > { %2096 = shalt.err (!%p2093_p12)
}
 0x2e7   : > { %1703 = dma.vmem_to_hbm [thread:$0]  (%p2271_p5), %s1620_s14, 256, %s3145_s9, %s1605_s28  }
 0x2e8 PF: > { %p1709_p13 = scmp.ge.s32.totalorder %s2131_s27, 2  ;;  %s1631_s15 = sand.u32 1, %s2119_s24  }
 0x2e9   : > { %s1632_s20 = scalar_lea.sflag [#allocation3], %s1631_s15 }
 0x2ea   : > { %p1706_p0 = pnand %p1709_p13, %p2275_p6 }
 0x2ec   : > { %p1707_p1 = pneg %p1706_p0 }
 0x2ee   : > { %2114 = dma.done.wait (%p1707_p1), %s1632_s20, 256  }
 0x2ef   : > { %2116 = vsyncadd (%p1707_p1), %s1632_s20, 4294967040  ;;  %p17_p2 = scmp.ge.s32.totalorder %s2258_s30, 4   ;;  %s3245_s24 = smov %s2123_s25 }
 0x2f0   : > { %s3246_s25 = smov %s2127_s26  ;;  %s3247_s26 = smov %s2269_s10 }
 0x2f1   : > { %s3248_s27 = smov %s2258_s30  ;;  %19 = sbr.rel (!%p17_p2) target bundleno = 3 (0x3), region = 83 }
 0x2f6   :  { %1637 = vsyncpa [#allocation3], 1 }
 0x2f7   :  { %1639 = vsyncpa [#allocation3 + $0x1], 1 }

</bundles_post_ra>
